<compile_context>
chip_gen: v7x
topology: tpu7x:2x2x1
jax: 0.10.0
libtpu: 0.0.40
codegen_flags: <defaults>
</compile_context>

<pallas_src>
import math
import numpy as np
import jax
import jax.numpy as jnp
from jax.experimental import pallas as pl
from jax.experimental.pallas import tpu as pltpu


# ---------------------------------------------------------------------------
# Parameter / constant construction (glue, plain numpy & eager JAX)
# ---------------------------------------------------------------------------
def fold_bn(gamma, beta, mean, var, eps=1e-5):
    scale = gamma / jnp.sqrt(var + eps)
    return scale, beta - mean * scale


def build_dct_filter(H, W, channel):
    # FcaNet 'top16' frequency selection.
    top_x = [0, 0, 6, 0, 0, 1, 1, 4, 5, 1, 3, 0, 0, 0, 3, 2]
    top_y = [0, 1, 0, 5, 2, 0, 2, 0, 0, 6, 0, 4, 6, 3, 5, 2]
    mapper_x = [u * (H // 7) for u in top_x]
    mapper_y = [v * (W // 7) for v in top_y]
    c_part = channel // len(mapper_x)

    def bf(pos, freq, length):
        r = math.cos(math.pi * freq * (pos + 0.5) / length) / math.sqrt(length)
        return r if freq == 0 else r * math.sqrt(2.0)

    filt = np.zeros((channel, H, W), np.float32)
    for i, (ux, vy) in enumerate(zip(mapper_x, mapper_y)):
        for tx in range(H):
            for ty in range(W):
                filt[i * c_part:(i + 1) * c_part, tx, ty] = bf(tx, ux, H) * bf(ty, vy, W)
    return jnp.asarray(np.transpose(filt, (1, 2, 0)))   # (H, W, C) for NHWC


def _shift_sel(K, W):
    """S[dx, wp, w] = 1 if wp == w + dx - K//2 and 0 <= wp < W (horizontal conv taps)."""
    p = K // 2
    S = np.zeros((K, W, W), np.float32)
    for dx in range(K):
        for w in range(W):
            wp = w + dx - p
            if 0 <= wp < W:
                S[dx, wp, w] = 1.0
    return S


def prepare_constants(P, H, W):
    """Fold BN and rebuild all conv weights as banded / block-diagonal matrices for the
    lane-dense (H, W*C) layout used inside the fused kernel.  Runs once, outside jit."""
    f32, bf16 = jnp.float32, jnp.bfloat16
    Cin = int(P["b_w1"].shape[2])
    Cmid = int(P["b_w1"].shape[3])
    Cout = int(P["conv2_w"].shape[3])
    Cr = int(P["fc1"].shape[1])
    CrP = max(8, Cr)                       # zero-pad tiny FC hidden dim (exact)

    S3 = jnp.asarray(_shift_sel(3, W))
    S7 = jnp.asarray(_shift_sel(7, W))
    eyeW = jnp.eye(W, dtype=f32)

    # dep conv2: 3x3 Cin->Cout (has bias).
    M2 = jnp.einsum("xuv,yxio->yuivo", S3, P["conv2_w"]).reshape(3, W * Cin, W * Cout)
    bC2 = jnp.tile(P["conv2_b"], W)[None, :]

    # Bottleneck conv1 (1x1) + BN1 folded.
    w1s = P["b_w1"][0, 0] * P["b_s1"][None, :]
    BD1 = jnp.kron(eyeW, w1s)                                    # (W*Cin, W*Cmid)
    b1 = jnp.tile(P["b_b1"], W)[None, :]

    # Bottleneck conv2 (3x3) + BN2 folded.
    w2s = P["b_w2"] * P["b_s2"]
    M2b = jnp.einsum("xuv,yxio->yuivo", S3, w2s).reshape(3, W * Cmid, W * Cmid)
    b2 = jnp.tile(P["b_b2"], W)[None, :]

    # Bottleneck conv3 (1x1) + BN3 folded: one (W*Cmid, W) matrix per output channel,
    # plus (W*Cin, W) residual-channel selection matrices.
    w3s = P["b_w3"][0, 0] * P["b_s3"][None, :]                   # (Cmid, Cin)
    K3 = jnp.stack([jnp.kron(eyeW, w3s[:, c:c + 1]) for c in range(Cin)])
    eyeC = jnp.eye(Cin, dtype=f32)
    R3 = jnp.stack([jnp.kron(eyeW, eyeC[:, c:c + 1]) for c in range(Cin)])
    b3 = jnp.tile(P["b_b3"][:, None], (1, W))                    # (Cin, W)

    # SpatialAttention 7x7 single-channel conv -> 7 banded (W, W) matrices.
    A = jnp.einsum("xuv,yx->yuv", S7, P["sa_w"])                 # (7, W, W)

    # FcaNet DCT channel attention constants.
    dctw = P["dctw"].reshape(H, W * Cout)
    Gsum = jnp.tile(jnp.eye(Cout, dtype=f32), (W, 1))            # (W*Cout, Cout)
    GsumT = Gsum.T                                               # (Cout, W*Cout)
    fc1p = jnp.pad(P["fc1"], ((0, 0), (0, CrP - Cr)))
    fc2p = jnp.pad(P["fc2"], ((0, CrP - Cr), (0, 0)))

    # Broadcast matrix: (H, W) spatial-attention map -> (H, W*Cout).
    Bsa = jnp.kron(eyeW, jnp.ones((1, Cout), f32))

    return {
        "M2": M2.astype(bf16), "bC2": bC2.astype(f32),
        "BD1": BD1.astype(bf16), "b1": b1.astype(f32),
        "M2b": M2b.astype(bf16), "b2": b2.astype(f32),
        "K3": K3.astype(bf16), "R3": R3.astype(bf16), "b3": b3.astype(f32),
        "A": A.astype(f32),
        "dctw": dctw.astype(f32), "Gsum": Gsum.astype(f32), "GsumT": GsumT.astype(f32),
        "fc1": fc1p.astype(f32), "fc2": fc2p.astype(f32),
        "Bsa": Bsa.astype(f32),
    }


# ---------------------------------------------------------------------------
# Fused DIM forward: one Pallas kernel, one grid step per image.
# ---------------------------------------------------------------------------
def dim_forward(dep, rgb, C):
    N, H, W, Cin = dep.shape
    Cout = C["M2"].shape[2] // W
    Cmid = C["BD1"].shape[1] // W
    WC_in, WC_mid, WC_out = W * Cin, W * Cmid, W * Cout
    f32, bf16 = jnp.float32, jnp.bfloat16

    dep_rows = dep.reshape(N, H, WC_in)     # free reshapes (same memory layout)
    rgb_rows = rgb.reshape(N, H, WC_in)

    def kernel(dep_ref, rgb_ref, m2_ref, bc2_ref, bd1_ref, b1_ref, m2b_ref, b2_ref,
               k3_ref, r3_ref, b3_ref, a_ref, dctw_ref, gsum_ref, gsumt_ref,
               fc1_ref, fc2_ref, bsa_ref, o_ref, dpad, rpad, mpad):
        dep_v = dep_ref[0]                                   # (H, W*Cin) f32
        rgb_v = rgb_ref[0]                                   # (H, W*Cin) f32
        rgb_b = rgb_v.astype(bf16)

        # ---- conv2(dep): 3x3 Cin->Cout as 3 banded matmuls --------------------
        dpad[0:1, :] = jnp.zeros((1, WC_in), f32)            # only borders re-zeroed
        dpad[H + 1:H + 2, :] = jnp.zeros((1, WC_in), f32)
        dpad[1:H + 1, :] = dep_v
        acc = jnp.dot(dpad[0:H, :].astype(bf16), m2_ref[0], preferred_element_type=f32)
        for dy in range(1, 3):
            acc = acc + jnp.dot(dpad[dy:dy + H, :].astype(bf16), m2_ref[dy],
                                preferred_element_type=f32)
        dep1 = acc + bc2_ref[...]                            # (H, W*Cout) f32

        # ---- Bottleneck(rgb): 1x1 -> 3x3 -> 1x1 (+res), only channel max needed
        t1 = jnp.maximum(jnp.dot(rgb_b, bd1_ref[...], preferred_element_type=f32)
                         + b1_ref[...], 0.0)                 # (H, W*Cmid)
        rpad[0:1, :] = jnp.zeros((1, WC_mid), f32)
        rpad[H + 1:H + 2, :] = jnp.zeros((1, WC_mid), f32)
        rpad[1:H + 1, :] = t1
        acc2 = jnp.dot(rpad[0:H, :].astype(bf16), m2b_ref[0], preferred_element_type=f32)
        for dy in range(1, 3):
            acc2 = acc2 + jnp.dot(rpad[dy:dy + H, :].astype(bf16), m2b_ref[dy],
                                  preferred_element_type=f32)
        t2 = jnp.maximum(acc2 + b2_ref[...], 0.0).astype(bf16)

        # conv3 per output channel + residual; max over channels commutes with ReLU.
        m = None
        for c in range(Cin):
            p = (jnp.dot(t2, k3_ref[c], preferred_element_type=f32)
                 + jnp.dot(rgb_b, r3_ref[c], preferred_element_type=f32)
                 + b3_ref[c:c + 1, :])                       # (H, W)
            m = p if m is None else jnp.maximum(m, p)
        m = jnp.maximum(m, 0.0)                              # channel-max of block output

        # ---- SpatialAttention: 7x7 conv on the max map, then sigmoid ----------
        mpad[0:3, :] = jnp.zeros((3, W), f32)
        mpad[H + 3:H + 6, :] = jnp.zeros((3, W), f32)
        mpad[3:H + 3, :] = m
        att = jnp.dot(mpad[0:H, :], a_ref[0], preferred_element_type=f32)
        for dy in range(1, 7):
            att = att + jnp.dot(mpad[dy:dy + H, :], a_ref[dy],
                                preferred_element_type=f32)
        sa = jax.nn.sigmoid(att)                             # (H, W)
        sa_rep = jnp.dot(sa, bsa_ref[...], preferred_element_type=f32)   # (H, W*Cout)

        # ---- FcaNet DCT channel attention on the in-VMEM dep1 ----------------
        colsum = jnp.sum(dep1 * dctw_ref[...], axis=0, keepdims=True)    # (1, W*Cout)
        y = jnp.dot(colsum, gsum_ref[...], preferred_element_type=f32)   # (1, Cout)
        z = jnp.maximum(jnp.dot(y, fc1_ref[...], preferred_element_type=f32), 0.0)
        s = jax.nn.sigmoid(jnp.dot(z, fc2_ref[...], preferred_element_type=f32))
        s_rep = jnp.dot(s, gsumt_ref[...], preferred_element_type=f32)   # (1, W*Cout)

        # ---- fuse = SpatialAttention(rgb) * (dep1 * channel_attention) --------
        o_ref[0] = sa_rep * (dep1 * s_rep)

    def const_spec(x):
        if x.ndim == 2:
            return pl.BlockSpec(tuple(x.shape), lambda n: (0, 0))
        return pl.BlockSpec(tuple(x.shape), lambda n: (0, 0, 0))

    consts = [C["M2"], C["bC2"], C["BD1"], C["b1"], C["M2b"], C["b2"],
              C["K3"], C["R3"], C["b3"], C["A"], C["dctw"], C["Gsum"],
              C["GsumT"], C["fc1"], C["fc2"], C["Bsa"]]

    in_specs = ([pl.BlockSpec((1, H, WC_in), lambda n: (n, 0, 0)),
                 pl.BlockSpec((1, H, WC_in), lambda n: (n, 0, 0))]
                + [const_spec(c) for c in consts])

    out = pl.pallas_call(
        kernel,
        out_shape=jax.ShapeDtypeStruct((N, H, WC_out), f32),
        grid_spec=pltpu.PrefetchScalarGridSpec(
            num_scalar_prefetch=0,
            grid=(N,),
            in_specs=in_specs,
            out_specs=pl.BlockSpec((1, H, WC_out), lambda n: (n, 0, 0)),
            scratch_shapes=[
                pltpu.VMEM((H + 2, WC_in), f32),     # vertically padded dep
                pltpu.VMEM((H + 2, WC_mid), f32),    # vertically padded t1
                pltpu.VMEM((H + 6, W), f32),         # vertically padded channel-max map
            ],
        ),
        compiler_params=pltpu.CompilerParams(dimension_semantics=("parallel",)),
    )(dep_rows, rgb_rows, *consts)
    return out.reshape(N, H, W, Cout)


# ---------------------------------------------------------------------------
# Pure-JAX reference for validation.
# ---------------------------------------------------------------------------
def _ref_conv(x, w, scale, bias, relu, residual=None):
    y = jax.lax.conv_general_dilated(x, w, (1, 1), "SAME",
                                     dimension_numbers=("NHWC", "HWIO", "NHWC"))
    y = y * scale.reshape(1, 1, 1, -1) + bias.reshape(1, 1, 1, -1)
    if residual is not None:
        y = y + residual
    if relu:
        y = jnp.maximum(y, 0.0)
    return y


def dim_forward_ref(dep, rgb, P):
    ones_out = jnp.ones((P["conv2_w"].shape[-1],), jnp.float32)
    dep1 = _ref_conv(dep, P["conv2_w"], ones_out, P["conv2_b"], relu=False)
    t1 = _ref_conv(rgb, P["b_w1"], P["b_s1"], P["b_b1"], relu=True)
    t2 = _ref_conv(t1, P["b_w2"], P["b_s2"], P["b_b2"], relu=True)
    rgb_out = _ref_conv(t2, P["b_w3"], P["b_s3"], P["b_b3"], relu=True, residual=rgb)
    # DCT channel attention
    y = jnp.sum(dep1 * P["dctw"][None], axis=(1, 2))                   # (N, C)
    z = jax.nn.sigmoid(jnp.maximum(y @ P["fc1"], 0.0) @ P["fc2"])      # (N, C)
    dep_dct = dep1 * z[:, None, None, :]
    # Spatial attention
    m = jnp.max(rgb_out, axis=-1, keepdims=True)                       # (N, H, W, 1)
    att = jax.lax.conv_general_dilated(m, P["sa_w"].reshape(7, 7, 1, 1), (1, 1), "SAME",
                                       dimension_numbers=("NHWC", "HWIO", "NHWC"))
    return jax.nn.sigmoid(att) * dep_dct


if __name__ == "__main__":
    N, H, W = 2, 16, 16
    Cin, Cout = 4, 32               # inchannels=4, outchannels=32, inputsolution=(16, 16)
    Cmid = Cin * 2                  # Bottleneck expansion = 2
    Cr = max(Cout // 16, 1)         # FcaNet reduction = 16

    key = jax.random.PRNGKey(0)
    ks = jax.random.split(key, 24)
    nrm = lambda k, s, sc=0.1: sc * jax.random.normal(k, s, dtype=jnp.float32)

    def make_bn(k, c):
        k1, k2, k3, k4 = jax.random.split(k, 4)
        gamma = 1.0 + 0.1 * jax.random.normal(k1, (c,), jnp.float32)
        beta = 0.1 * jax.random.normal(k2, (c,), jnp.float32)
        mean = 0.1 * jax.random.normal(k3, (c,), jnp.float32)
        var = 1.0 + 0.1 * jnp.abs(jax.random.normal(k4, (c,), jnp.float32))
        return fold_bn(gamma, beta, mean, var)

    b_s1, b_b1 = make_bn(ks[4], Cmid)
    b_s2, b_b2 = make_bn(ks[5], Cmid)
    b_s3, b_b3 = make_bn(ks[6], Cin)

    P = {
        "conv2_w": nrm(ks[0], (3, 3, Cin, Cout)),
        "conv2_b": nrm(ks[1], (Cout,)),
        "b_w1": nrm(ks[2], (1, 1, Cin, Cmid), 0.3),
        "b_w2": nrm(ks[3], (3, 3, Cmid, Cmid), 0.15),
        "b_w3": nrm(ks[7], (1, 1, Cmid, Cin), 0.3),
        "b_s1": b_s1, "b_b1": b_b1,
        "b_s2": b_s2, "b_b2": b_b2,
        "b_s3": b_s3, "b_b3": b_b3,
        "fc1": nrm(ks[8], (Cout, Cr), 0.3),
        "fc2": nrm(ks[9], (Cr, Cout), 0.3),
        "sa_w": nrm(ks[10], (7, 7)),
        "dctw": build_dct_filter(H, W, Cout),
    }

    dep = jax.random.normal(ks[11], (N, H, W, Cin), jnp.float32)
    rgb = jax.random.normal(ks[12], (N, H, W, Cin), jnp.float32)

    C = prepare_constants(P, H, W)                 # one-time weight repacking
    fuse = jax.jit(dim_forward)(dep, rgb, C)
    fuse = jax.block_until_ready(fuse)

    ref = jax.block_until_ready(dim_forward_ref(dep, rgb, P))
    assert fuse.shape == (N, H, W, Cout)
    max_err = float(jnp.max(jnp.abs(fuse - ref)))
    assert bool(jnp.allclose(fuse, ref, atol=2e-2, rtol=2e-2)), f"max abs err {max_err}"

    print("KERNEL_OK")
</pallas_src>

<mosaic_0001>
module attributes {stable_mosaic.version = 11 : i64} {
  func.func @kernel(%arg0: i32, %arg1: memref<1x16x64xf32, #tpu.memory_space<vmem>>, %arg2: memref<1x16x64xf32, #tpu.memory_space<vmem>>, %arg3: memref<3x64x512xbf16, #tpu.memory_space<vmem>>, %arg4: memref<1x512xf32, #tpu.memory_space<vmem>>, %arg5: memref<64x128xbf16, #tpu.memory_space<vmem>>, %arg6: memref<1x128xf32, #tpu.memory_space<vmem>>, %arg7: memref<3x128x128xbf16, #tpu.memory_space<vmem>>, %arg8: memref<1x128xf32, #tpu.memory_space<vmem>>, %arg9: memref<4x128x16xbf16, #tpu.memory_space<vmem>>, %arg10: memref<4x64x16xbf16, #tpu.memory_space<vmem>>, %arg11: memref<4x16xf32, #tpu.memory_space<vmem>>, %arg12: memref<7x16x16xf32, #tpu.memory_space<vmem>>, %arg13: memref<16x512xf32, #tpu.memory_space<vmem>>, %arg14: memref<512x32xf32, #tpu.memory_space<vmem>>, %arg15: memref<32x512xf32, #tpu.memory_space<vmem>>, %arg16: memref<32x8xf32, #tpu.memory_space<vmem>>, %arg17: memref<8x32xf32, #tpu.memory_space<vmem>>, %arg18: memref<16x512xf32, #tpu.memory_space<vmem>>, %arg19: memref<1x16x512xf32, #tpu.memory_space<vmem>>, %arg20: memref<18x64xf32, #tpu.memory_space<vmem>>, %arg21: memref<18x128xf32, #tpu.memory_space<vmem>>, %arg22: memref<22x16xf32, #tpu.memory_space<vmem>>) attributes {dimension_semantics = [#tpu.dimension_semantics<parallel>], iteration_bounds = array<i64: 2>, scalar_prefetch = 0 : i64, scratch_operands = 3 : i64, tpu.core_type = #tpu.core_type<tc>, window_params = [{transform_indices = @transform_0, window_bounds = array<i64: 1, 16, 64>}, {transform_indices = @transform_1, window_bounds = array<i64: 1, 16, 64>}, {pipeline_mode = #tpu.pipeline_mode<synchronous>, transform_indices = @transform_2, window_bounds = array<i64: 3, 64, 512>}, {pipeline_mode = #tpu.pipeline_mode<synchronous>, transform_indices = @transform_3, window_bounds = array<i64: 1, 512>}, {pipeline_mode = #tpu.pipeline_mode<synchronous>, transform_indices = @transform_4, window_bounds = array<i64: 64, 128>}, {pipeline_mode = #tpu.pipeline_mode<synchronous>, transform_indices = @transform_5, window_bounds = array<i64: 1, 128>}, {pipeline_mode = #tpu.pipeline_mode<synchronous>, transform_indices = @transform_6, window_bounds = array<i64: 3, 128, 128>}, {pipeline_mode = #tpu.pipeline_mode<synchronous>, transform_indices = @transform_7, window_bounds = array<i64: 1, 128>}, {pipeline_mode = #tpu.pipeline_mode<synchronous>, transform_indices = @transform_8, window_bounds = array<i64: 4, 128, 16>}, {pipeline_mode = #tpu.pipeline_mode<synchronous>, transform_indices = @transform_9, window_bounds = array<i64: 4, 64, 16>}, {pipeline_mode = #tpu.pipeline_mode<synchronous>, transform_indices = @transform_10, window_bounds = array<i64: 4, 16>}, {pipeline_mode = #tpu.pipeline_mode<synchronous>, transform_indices = @transform_11, window_bounds = array<i64: 7, 16, 16>}, {pipeline_mode = #tpu.pipeline_mode<synchronous>, transform_indices = @transform_12, window_bounds = array<i64: 16, 512>}, {pipeline_mode = #tpu.pipeline_mode<synchronous>, transform_indices = @transform_13, window_bounds = array<i64: 512, 32>}, {pipeline_mode = #tpu.pipeline_mode<synchronous>, transform_indices = @transform_14, window_bounds = array<i64: 32, 512>}, {pipeline_mode = #tpu.pipeline_mode<synchronous>, transform_indices = @transform_15, window_bounds = array<i64: 32, 8>}, {pipeline_mode = #tpu.pipeline_mode<synchronous>, transform_indices = @transform_16, window_bounds = array<i64: 8, 32>}, {pipeline_mode = #tpu.pipeline_mode<synchronous>, transform_indices = @transform_17, window_bounds = array<i64: 16, 512>}, {transform_indices = @transform_18, window_bounds = array<i64: 1, 16, 512>}]} {
    %c0 = arith.constant 0 : index
    %c0_0 = arith.constant 0 : index
    %c0_1 = arith.constant 0 : index
    %0 = vector.load %arg1[%c0, %c0_0, %c0_1] : memref<1x16x64xf32, #tpu.memory_space<vmem>>, vector<1x16x64xf32>
    %1 = vector.shape_cast %0 : vector<1x16x64xf32> to vector<16x64xf32>
    %c0_2 = arith.constant 0 : index
    %c0_3 = arith.constant 0 : index
    %c0_4 = arith.constant 0 : index
    %2 = vector.load %arg2[%c0_2, %c0_3, %c0_4] : memref<1x16x64xf32, #tpu.memory_space<vmem>>, vector<1x16x64xf32>
    %3 = vector.shape_cast %2 : vector<1x16x64xf32> to vector<16x64xf32>
    %4 = arith.truncf %3 : vector<16x64xf32> to vector<16x64xbf16>
    %cst = arith.constant 0.000000e+00 : f32
    %5 = vector.broadcast %cst : f32 to vector<1x64xf32>
    %c0_5 = arith.constant 0 : index
    %c0_6 = arith.constant 0 : index
    %6 = vector.load %arg20[%c0_5, %c0_6] : memref<18x64xf32, #tpu.memory_space<vmem>>, vector<1x64xf32>
    tpu.vector_store %arg20[%c0_5, %c0_6], %5 {strides = array<i32>} : memref<18x64xf32, #tpu.memory_space<vmem>>, vector<1x64xf32>,
    %cst_7 = arith.constant 0.000000e+00 : f32
    %7 = vector.broadcast %cst_7 : f32 to vector<1x64xf32>
    %c17 = arith.constant 17 : index
    %c0_8 = arith.constant 0 : index
    %8 = vector.load %arg20[%c17, %c0_8] : memref<18x64xf32, #tpu.memory_space<vmem>>, vector<1x64xf32>
    tpu.vector_store %arg20[%c17, %c0_8], %7 {strides = array<i32>} : memref<18x64xf32, #tpu.memory_space<vmem>>, vector<1x64xf32>,
    %c1 = arith.constant 1 : index
    %c0_9 = arith.constant 0 : index
    %9 = vector.load %arg20[%c1, %c0_9] : memref<18x64xf32, #tpu.memory_space<vmem>>, vector<16x64xf32>
    tpu.vector_store %arg20[%c1, %c0_9], %1 {strides = array<i32>} : memref<18x64xf32, #tpu.memory_space<vmem>>, vector<16x64xf32>,
    %c0_10 = arith.constant 0 : index
    %c0_11 = arith.constant 0 : index
    %10 = vector.load %arg20[%c0_10, %c0_11] : memref<18x64xf32, #tpu.memory_space<vmem>>, vector<16x64xf32>
    %11 = arith.truncf %10 : vector<16x64xf32> to vector<16x64xbf16>
    %c0_12 = arith.constant 0 : index
    %c0_13 = arith.constant 0 : index
    %c0_14 = arith.constant 0 : index
    %12 = vector.load %arg3[%c0_12, %c0_13, %c0_14] : memref<3x64x512xbf16, #tpu.memory_space<vmem>>, vector<1x64x512xbf16>
    %13 = vector.shape_cast %12 : vector<1x64x512xbf16> to vector<64x512xbf16>
    %cst_15 = arith.constant dense<0.000000e+00> : vector<16x512xf32>
    %14 = tpu.matmul %11, %13, %cst_15 {dimension_numbers = #tpu.dot_dimension_numbers<[1], [0], [0], [1], [0, 0, 1, 1], [], []>} : vector<16x64xbf16>, vector<64x512xbf16>, vector<16x512xf32> -> vector<16x512xf32>
    %c1_16 = arith.constant 1 : index
    %c0_17 = arith.constant 0 : index
    %15 = vector.load %arg20[%c1_16, %c0_17] : memref<18x64xf32, #tpu.memory_space<vmem>>, vector<16x64xf32>
    %16 = arith.truncf %15 : vector<16x64xf32> to vector<16x64xbf16>
    %c1_18 = arith.constant 1 : index
    %c0_19 = arith.constant 0 : index
    %c0_20 = arith.constant 0 : index
    %17 = vector.load %arg3[%c1_18, %c0_19, %c0_20] : memref<3x64x512xbf16, #tpu.memory_space<vmem>>, vector<1x64x512xbf16>
    %18 = vector.shape_cast %17 : vector<1x64x512xbf16> to vector<64x512xbf16>
    %cst_21 = arith.constant dense<0.000000e+00> : vector<16x512xf32>
    %19 = tpu.matmul %16, %18, %cst_21 {dimension_numbers = #tpu.dot_dimension_numbers<[1], [0], [0], [1], [0, 0, 1, 1], [], []>} : vector<16x64xbf16>, vector<64x512xbf16>, vector<16x512xf32> -> vector<16x512xf32>
    %20 = arith.addf %14, %19 : vector<16x512xf32>
    %c2 = arith.constant 2 : index
    %c0_22 = arith.constant 0 : index
    %21 = vector.load %arg20[%c2, %c0_22] : memref<18x64xf32, #tpu.memory_space<vmem>>, vector<16x64xf32>
    %22 = arith.truncf %21 : vector<16x64xf32> to vector<16x64xbf16>
    %c2_23 = arith.constant 2 : index
    %c0_24 = arith.constant 0 : index
    %c0_25 = arith.constant 0 : index
    %23 = vector.load %arg3[%c2_23, %c0_24, %c0_25] : memref<3x64x512xbf16, #tpu.memory_space<vmem>>, vector<1x64x512xbf16>
    %24 = vector.shape_cast %23 : vector<1x64x512xbf16> to vector<64x512xbf16>
    %cst_26 = arith.constant dense<0.000000e+00> : vector<16x512xf32>
    %25 = tpu.matmul %22, %24, %cst_26 {dimension_numbers = #tpu.dot_dimension_numbers<[1], [0], [0], [1], [0, 0, 1, 1], [], []>} : vector<16x64xbf16>, vector<64x512xbf16>, vector<16x512xf32> -> vector<16x512xf32>
    %26 = arith.addf %20, %25 : vector<16x512xf32>
    %c0_27 = arith.constant 0 : index
    %c0_28 = arith.constant 0 : index
    %27 = vector.load %arg4[%c0_27, %c0_28] : memref<1x512xf32, #tpu.memory_space<vmem>>, vector<1x512xf32>
    %28 = vector.broadcast %27 : vector<1x512xf32> to vector<16x512xf32>
    %29 = arith.addf %26, %28 : vector<16x512xf32>
    %c0_29 = arith.constant 0 : index
    %c0_30 = arith.constant 0 : index
    %30 = vector.load %arg5[%c0_29, %c0_30] : memref<64x128xbf16, #tpu.memory_space<vmem>>, vector<64x128xbf16>
    %cst_31 = arith.constant dense<0.000000e+00> : vector<16x128xf32>
    %31 = tpu.matmul %4, %30, %cst_31 {dimension_numbers = #tpu.dot_dimension_numbers<[1], [0], [0], [1], [0, 0, 1, 1], [], []>} : vector<16x64xbf16>, vector<64x128xbf16>, vector<16x128xf32> -> vector<16x128xf32>
    %c0_32 = arith.constant 0 : index
    %c0_33 = arith.constant 0 : index
    %32 = vector.load %arg6[%c0_32, %c0_33] : memref<1x128xf32, #tpu.memory_space<vmem>>, vector<1x128xf32>
    %33 = vector.broadcast %32 : vector<1x128xf32> to vector<16x128xf32>
    %34 = arith.addf %31, %33 : vector<16x128xf32>
    %cst_34 = arith.constant 0.000000e+00 : f32
    %35 = vector.broadcast %cst_34 : f32 to vector<16x128xf32>
    %36 = arith.maximumf %34, %35 : vector<16x128xf32>
    %cst_35 = arith.constant 0.000000e+00 : f32
    %37 = vector.broadcast %cst_35 : f32 to vector<1x128xf32>
    %c0_36 = arith.constant 0 : index
    %c0_37 = arith.constant 0 : index
    %38 = vector.load %arg21[%c0_36, %c0_37] : memref<18x128xf32, #tpu.memory_space<vmem>>, vector<1x128xf32>
    tpu.vector_store %arg21[%c0_36, %c0_37], %37 {strides = array<i32>} : memref<18x128xf32, #tpu.memory_space<vmem>>, vector<1x128xf32>,
    %cst_38 = arith.constant 0.000000e+00 : f32
    %39 = vector.broadcast %cst_38 : f32 to vector<1x128xf32>
    %c17_39 = arith.constant 17 : index
    %c0_40 = arith.constant 0 : index
    %40 = vector.load %arg21[%c17_39, %c0_40] : memref<18x128xf32, #tpu.memory_space<vmem>>, vector<1x128xf32>
    tpu.vector_store %arg21[%c17_39, %c0_40], %39 {strides = array<i32>} : memref<18x128xf32, #tpu.memory_space<vmem>>, vector<1x128xf32>,
    %c1_41 = arith.constant 1 : index
    %c0_42 = arith.constant 0 : index
    %41 = vector.load %arg21[%c1_41, %c0_42] : memref<18x128xf32, #tpu.memory_space<vmem>>, vector<16x128xf32>
    tpu.vector_store %arg21[%c1_41, %c0_42], %36 {strides = array<i32>} : memref<18x128xf32, #tpu.memory_space<vmem>>, vector<16x128xf32>,
    %c0_43 = arith.constant 0 : index
    %c0_44 = arith.constant 0 : index
    %42 = vector.load %arg21[%c0_43, %c0_44] : memref<18x128xf32, #tpu.memory_space<vmem>>, vector<16x128xf32>
    %43 = arith.truncf %42 : vector<16x128xf32> to vector<16x128xbf16>
    %c0_45 = arith.constant 0 : index
    %c0_46 = arith.constant 0 : index
    %c0_47 = arith.constant 0 : index
    %44 = vector.load %arg7[%c0_45, %c0_46, %c0_47] : memref<3x128x128xbf16, #tpu.memory_space<vmem>>, vector<1x128x128xbf16>
    %45 = vector.shape_cast %44 : vector<1x128x128xbf16> to vector<128x128xbf16>
    %cst_48 = arith.constant dense<0.000000e+00> : vector<16x128xf32>
    %46 = tpu.matmul %43, %45, %cst_48 {dimension_numbers = #tpu.dot_dimension_numbers<[1], [0], [0], [1], [0, 0, 1, 1], [], []>} : vector<16x128xbf16>, vector<128x128xbf16>, vector<16x128xf32> -> vector<16x128xf32>
    %c1_49 = arith.constant 1 : index
    %c0_50 = arith.constant 0 : index
    %47 = vector.load %arg21[%c1_49, %c0_50] : memref<18x128xf32, #tpu.memory_space<vmem>>, vector<16x128xf32>
    %48 = arith.truncf %47 : vector<16x128xf32> to vector<16x128xbf16>
    %c1_51 = arith.constant 1 : index
    %c0_52 = arith.constant 0 : index
    %c0_53 = arith.constant 0 : index
    %49 = vector.load %arg7[%c1_51, %c0_52, %c0_53] : memref<3x128x128xbf16, #tpu.memory_space<vmem>>, vector<1x128x128xbf16>
    %50 = vector.shape_cast %49 : vector<1x128x128xbf16> to vector<128x128xbf16>
    %cst_54 = arith.constant dense<0.000000e+00> : vector<16x128xf32>
    %51 = tpu.matmul %48, %50, %cst_54 {dimension_numbers = #tpu.dot_dimension_numbers<[1], [0], [0], [1], [0, 0, 1, 1], [], []>} : vector<16x128xbf16>, vector<128x128xbf16>, vector<16x128xf32> -> vector<16x128xf32>
    %52 = arith.addf %46, %51 : vector<16x128xf32>
    %c2_55 = arith.constant 2 : index
    %c0_56 = arith.constant 0 : index
    %53 = vector.load %arg21[%c2_55, %c0_56] : memref<18x128xf32, #tpu.memory_space<vmem>>, vector<16x128xf32>
    %54 = arith.truncf %53 : vector<16x128xf32> to vector<16x128xbf16>
    %c2_57 = arith.constant 2 : index
    %c0_58 = arith.constant 0 : index
    %c0_59 = arith.constant 0 : index
    %55 = vector.load %arg7[%c2_57, %c0_58, %c0_59] : memref<3x128x128xbf16, #tpu.memory_space<vmem>>, vector<1x128x128xbf16>
    %56 = vector.shape_cast %55 : vector<1x128x128xbf16> to vector<128x128xbf16>
    %cst_60 = arith.constant dense<0.000000e+00> : vector<16x128xf32>
    %57 = tpu.matmul %54, %56, %cst_60 {dimension_numbers = #tpu.dot_dimension_numbers<[1], [0], [0], [1], [0, 0, 1, 1], [], []>} : vector<16x128xbf16>, vector<128x128xbf16>, vector<16x128xf32> -> vector<16x128xf32>
    %58 = arith.addf %52, %57 : vector<16x128xf32>
    %c0_61 = arith.constant 0 : index
    %c0_62 = arith.constant 0 : index
    %59 = vector.load %arg8[%c0_61, %c0_62] : memref<1x128xf32, #tpu.memory_space<vmem>>, vector<1x128xf32>
    %60 = vector.broadcast %59 : vector<1x128xf32> to vector<16x128xf32>
    %61 = arith.addf %58, %60 : vector<16x128xf32>
    %cst_63 = arith.constant 0.000000e+00 : f32
    %62 = vector.broadcast %cst_63 : f32 to vector<16x128xf32>
    %63 = arith.maximumf %61, %62 : vector<16x128xf32>
    %64 = arith.truncf %63 : vector<16x128xf32> to vector<16x128xbf16>
    %c0_64 = arith.constant 0 : index
    %c0_65 = arith.constant 0 : index
    %c0_66 = arith.constant 0 : index
    %65 = vector.load %arg9[%c0_64, %c0_65, %c0_66] : memref<4x128x16xbf16, #tpu.memory_space<vmem>>, vector<1x128x16xbf16>
    %66 = vector.shape_cast %65 : vector<1x128x16xbf16> to vector<128x16xbf16>
    %cst_67 = arith.constant dense<0.000000e+00> : vector<16x16xf32>
    %67 = tpu.matmul %64, %66, %cst_67 {dimension_numbers = #tpu.dot_dimension_numbers<[1], [0], [0], [1], [0, 0, 1, 1], [], []>} : vector<16x128xbf16>, vector<128x16xbf16>, vector<16x16xf32> -> vector<16x16xf32>
    %c0_68 = arith.constant 0 : index
    %c0_69 = arith.constant 0 : index
    %c0_70 = arith.constant 0 : index
    %68 = vector.load %arg10[%c0_68, %c0_69, %c0_70] : memref<4x64x16xbf16, #tpu.memory_space<vmem>>, vector<1x64x16xbf16>
    %69 = vector.shape_cast %68 : vector<1x64x16xbf16> to vector<64x16xbf16>
    %cst_71 = arith.constant dense<0.000000e+00> : vector<16x16xf32>
    %70 = tpu.matmul %4, %69, %cst_71 {dimension_numbers = #tpu.dot_dimension_numbers<[1], [0], [0], [1], [0, 0, 1, 1], [], []>} : vector<16x64xbf16>, vector<64x16xbf16>, vector<16x16xf32> -> vector<16x16xf32>
    %71 = arith.addf %67, %70 : vector<16x16xf32>
    %c0_72 = arith.constant 0 : index
    %c0_73 = arith.constant 0 : index
    %72 = vector.load %arg11[%c0_72, %c0_73] : memref<4x16xf32, #tpu.memory_space<vmem>>, vector<1x16xf32>
    %73 = vector.broadcast %72 : vector<1x16xf32> to vector<16x16xf32>
    %74 = arith.addf %71, %73 : vector<16x16xf32>
    %c1_74 = arith.constant 1 : index
    %c0_75 = arith.constant 0 : index
    %c0_76 = arith.constant 0 : index
    %75 = vector.load %arg9[%c1_74, %c0_75, %c0_76] : memref<4x128x16xbf16, #tpu.memory_space<vmem>>, vector<1x128x16xbf16>
    %76 = vector.shape_cast %75 : vector<1x128x16xbf16> to vector<128x16xbf16>
    %cst_77 = arith.constant dense<0.000000e+00> : vector<16x16xf32>
    %77 = tpu.matmul %64, %76, %cst_77 {dimension_numbers = #tpu.dot_dimension_numbers<[1], [0], [0], [1], [0, 0, 1, 1], [], []>} : vector<16x128xbf16>, vector<128x16xbf16>, vector<16x16xf32> -> vector<16x16xf32>
    %c1_78 = arith.constant 1 : index
    %c0_79 = arith.constant 0 : index
    %c0_80 = arith.constant 0 : index
    %78 = vector.load %arg10[%c1_78, %c0_79, %c0_80] : memref<4x64x16xbf16, #tpu.memory_space<vmem>>, vector<1x64x16xbf16>
    %79 = vector.shape_cast %78 : vector<1x64x16xbf16> to vector<64x16xbf16>
    %cst_81 = arith.constant dense<0.000000e+00> : vector<16x16xf32>
    %80 = tpu.matmul %4, %79, %cst_81 {dimension_numbers = #tpu.dot_dimension_numbers<[1], [0], [0], [1], [0, 0, 1, 1], [], []>} : vector<16x64xbf16>, vector<64x16xbf16>, vector<16x16xf32> -> vector<16x16xf32>
    %81 = arith.addf %77, %80 : vector<16x16xf32>
    %c1_82 = arith.constant 1 : index
    %c0_83 = arith.constant 0 : index
    %82 = vector.load %arg11[%c1_82, %c0_83] : memref<4x16xf32, #tpu.memory_space<vmem>>, vector<1x16xf32>
    %83 = vector.broadcast %82 : vector<1x16xf32> to vector<16x16xf32>
    %84 = arith.addf %81, %83 : vector<16x16xf32>
    %85 = arith.maximumf %74, %84 : vector<16x16xf32>
    %c2_84 = arith.constant 2 : index
    %c0_85 = arith.constant 0 : index
    %c0_86 = arith.constant 0 : index
    %86 = vector.load %arg9[%c2_84, %c0_85, %c0_86] : memref<4x128x16xbf16, #tpu.memory_space<vmem>>, vector<1x128x16xbf16>
    %87 = vector.shape_cast %86 : vector<1x128x16xbf16> to vector<128x16xbf16>
    %cst_87 = arith.constant dense<0.000000e+00> : vector<16x16xf32>
    %88 = tpu.matmul %64, %87, %cst_87 {dimension_numbers = #tpu.dot_dimension_numbers<[1], [0], [0], [1], [0, 0, 1, 1], [], []>} : vector<16x128xbf16>, vector<128x16xbf16>, vector<16x16xf32> -> vector<16x16xf32>
    %c2_88 = arith.constant 2 : index
    %c0_89 = arith.constant 0 : index
    %c0_90 = arith.constant 0 : index
    %89 = vector.load %arg10[%c2_88, %c0_89, %c0_90] : memref<4x64x16xbf16, #tpu.memory_space<vmem>>, vector<1x64x16xbf16>
    %90 = vector.shape_cast %89 : vector<1x64x16xbf16> to vector<64x16xbf16>
    %cst_91 = arith.constant dense<0.000000e+00> : vector<16x16xf32>
    %91 = tpu.matmul %4, %90, %cst_91 {dimension_numbers = #tpu.dot_dimension_numbers<[1], [0], [0], [1], [0, 0, 1, 1], [], []>} : vector<16x64xbf16>, vector<64x16xbf16>, vector<16x16xf32> -> vector<16x16xf32>
    %92 = arith.addf %88, %91 : vector<16x16xf32>
    %c2_92 = arith.constant 2 : index
    %c0_93 = arith.constant 0 : index
    %93 = vector.load %arg11[%c2_92, %c0_93] : memref<4x16xf32, #tpu.memory_space<vmem>>, vector<1x16xf32>
    %94 = vector.broadcast %93 : vector<1x16xf32> to vector<16x16xf32>
    %95 = arith.addf %92, %94 : vector<16x16xf32>
    %96 = arith.maximumf %85, %95 : vector<16x16xf32>
    %c3 = arith.constant 3 : index
    %c0_94 = arith.constant 0 : index
    %c0_95 = arith.constant 0 : index
    %97 = vector.load %arg9[%c3, %c0_94, %c0_95] : memref<4x128x16xbf16, #tpu.memory_space<vmem>>, vector<1x128x16xbf16>
    %98 = vector.shape_cast %97 : vector<1x128x16xbf16> to vector<128x16xbf16>
    %cst_96 = arith.constant dense<0.000000e+00> : vector<16x16xf32>
    %99 = tpu.matmul %64, %98, %cst_96 {dimension_numbers = #tpu.dot_dimension_numbers<[1], [0], [0], [1], [0, 0, 1, 1], [], []>} : vector<16x128xbf16>, vector<128x16xbf16>, vector<16x16xf32> -> vector<16x16xf32>
    %c3_97 = arith.constant 3 : index
    %c0_98 = arith.constant 0 : index
    %c0_99 = arith.constant 0 : index
    %100 = vector.load %arg10[%c3_97, %c0_98, %c0_99] : memref<4x64x16xbf16, #tpu.memory_space<vmem>>, vector<1x64x16xbf16>
    %101 = vector.shape_cast %100 : vector<1x64x16xbf16> to vector<64x16xbf16>
    %cst_100 = arith.constant dense<0.000000e+00> : vector<16x16xf32>
    %102 = tpu.matmul %4, %101, %cst_100 {dimension_numbers = #tpu.dot_dimension_numbers<[1], [0], [0], [1], [0, 0, 1, 1], [], []>} : vector<16x64xbf16>, vector<64x16xbf16>, vector<16x16xf32> -> vector<16x16xf32>
    %103 = arith.addf %99, %102 : vector<16x16xf32>
    %c3_101 = arith.constant 3 : index
    %c0_102 = arith.constant 0 : index
    %104 = vector.load %arg11[%c3_101, %c0_102] : memref<4x16xf32, #tpu.memory_space<vmem>>, vector<1x16xf32>
    %105 = vector.broadcast %104 : vector<1x16xf32> to vector<16x16xf32>
    %106 = arith.addf %103, %105 : vector<16x16xf32>
    %107 = arith.maximumf %96, %106 : vector<16x16xf32>
    %cst_103 = arith.constant 0.000000e+00 : f32
    %108 = vector.broadcast %cst_103 : f32 to vector<16x16xf32>
    %109 = arith.maximumf %107, %108 : vector<16x16xf32>
    %cst_104 = arith.constant 0.000000e+00 : f32
    %110 = vector.broadcast %cst_104 : f32 to vector<3x16xf32>
    %c0_105 = arith.constant 0 : index
    %c0_106 = arith.constant 0 : index
    %111 = vector.load %arg22[%c0_105, %c0_106] : memref<22x16xf32, #tpu.memory_space<vmem>>, vector<3x16xf32>
    tpu.vector_store %arg22[%c0_105, %c0_106], %110 {strides = array<i32>} : memref<22x16xf32, #tpu.memory_space<vmem>>, vector<3x16xf32>,
    %cst_107 = arith.constant 0.000000e+00 : f32
    %112 = vector.broadcast %cst_107 : f32 to vector<3x16xf32>
    %c19 = arith.constant 19 : index
    %c0_108 = arith.constant 0 : index
    %113 = vector.load %arg22[%c19, %c0_108] : memref<22x16xf32, #tpu.memory_space<vmem>>, vector<3x16xf32>
    tpu.vector_store %arg22[%c19, %c0_108], %112 {strides = array<i32>} : memref<22x16xf32, #tpu.memory_space<vmem>>, vector<3x16xf32>,
    %c3_109 = arith.constant 3 : index
    %c0_110 = arith.constant 0 : index
    %114 = vector.load %arg22[%c3_109, %c0_110] : memref<22x16xf32, #tpu.memory_space<vmem>>, vector<16x16xf32>
    tpu.vector_store %arg22[%c3_109, %c0_110], %109 {strides = array<i32>} : memref<22x16xf32, #tpu.memory_space<vmem>>, vector<16x16xf32>,
    %c0_111 = arith.constant 0 : index
    %c0_112 = arith.constant 0 : index
    %115 = vector.load %arg22[%c0_111, %c0_112] : memref<22x16xf32, #tpu.memory_space<vmem>>, vector<16x16xf32>
    %c0_113 = arith.constant 0 : index
    %c0_114 = arith.constant 0 : index
    %c0_115 = arith.constant 0 : index
    %116 = vector.load %arg12[%c0_113, %c0_114, %c0_115] : memref<7x16x16xf32, #tpu.memory_space<vmem>>, vector<1x16x16xf32>
    %117 = vector.shape_cast %116 : vector<1x16x16xf32> to vector<16x16xf32>
    %cst_116 = arith.constant dense<0.000000e+00> : vector<16x16xf32>
    %118 = tpu.matmul %115, %117, %cst_116 {dimension_numbers = #tpu.dot_dimension_numbers<[1], [0], [0], [1], [0, 0, 1, 1], [], []>} : vector<16x16xf32>, vector<16x16xf32>, vector<16x16xf32> -> vector<16x16xf32>
    %c1_117 = arith.constant 1 : index
    %c0_118 = arith.constant 0 : index
    %119 = vector.load %arg22[%c1_117, %c0_118] : memref<22x16xf32, #tpu.memory_space<vmem>>, vector<16x16xf32>
    %c1_119 = arith.constant 1 : index
    %c0_120 = arith.constant 0 : index
    %c0_121 = arith.constant 0 : index
    %120 = vector.load %arg12[%c1_119, %c0_120, %c0_121] : memref<7x16x16xf32, #tpu.memory_space<vmem>>, vector<1x16x16xf32>
    %121 = vector.shape_cast %120 : vector<1x16x16xf32> to vector<16x16xf32>
    %cst_122 = arith.constant dense<0.000000e+00> : vector<16x16xf32>
    %122 = tpu.matmul %119, %121, %cst_122 {dimension_numbers = #tpu.dot_dimension_numbers<[1], [0], [0], [1], [0, 0, 1, 1], [], []>} : vector<16x16xf32>, vector<16x16xf32>, vector<16x16xf32> -> vector<16x16xf32>
    %123 = arith.addf %118, %122 : vector<16x16xf32>
    %c2_123 = arith.constant 2 : index
    %c0_124 = arith.constant 0 : index
    %124 = vector.load %arg22[%c2_123, %c0_124] : memref<22x16xf32, #tpu.memory_space<vmem>>, vector<16x16xf32>
    %c2_125 = arith.constant 2 : index
    %c0_126 = arith.constant 0 : index
    %c0_127 = arith.constant 0 : index
    %125 = vector.load %arg12[%c2_125, %c0_126, %c0_127] : memref<7x16x16xf32, #tpu.memory_space<vmem>>, vector<1x16x16xf32>
    %126 = vector.shape_cast %125 : vector<1x16x16xf32> to vector<16x16xf32>
    %cst_128 = arith.constant dense<0.000000e+00> : vector<16x16xf32>
    %127 = tpu.matmul %124, %126, %cst_128 {dimension_numbers = #tpu.dot_dimension_numbers<[1], [0], [0], [1], [0, 0, 1, 1], [], []>} : vector<16x16xf32>, vector<16x16xf32>, vector<16x16xf32> -> vector<16x16xf32>
    %128 = arith.addf %123, %127 : vector<16x16xf32>
    %c3_129 = arith.constant 3 : index
    %c0_130 = arith.constant 0 : index
    %129 = vector.load %arg22[%c3_129, %c0_130] : memref<22x16xf32, #tpu.memory_space<vmem>>, vector<16x16xf32>
    %c3_131 = arith.constant 3 : index
    %c0_132 = arith.constant 0 : index
    %c0_133 = arith.constant 0 : index
    %130 = vector.load %arg12[%c3_131, %c0_132, %c0_133] : memref<7x16x16xf32, #tpu.memory_space<vmem>>, vector<1x16x16xf32>
    %131 = vector.shape_cast %130 : vector<1x16x16xf32> to vector<16x16xf32>
    %cst_134 = arith.constant dense<0.000000e+00> : vector<16x16xf32>
    %132 = tpu.matmul %129, %131, %cst_134 {dimension_numbers = #tpu.dot_dimension_numbers<[1], [0], [0], [1], [0, 0, 1, 1], [], []>} : vector<16x16xf32>, vector<16x16xf32>, vector<16x16xf32> -> vector<16x16xf32>
    %133 = arith.addf %128, %132 : vector<16x16xf32>
    %c4 = arith.constant 4 : index
    %c0_135 = arith.constant 0 : index
    %134 = vector.load %arg22[%c4, %c0_135] : memref<22x16xf32, #tpu.memory_space<vmem>>, vector<16x16xf32>
    %c4_136 = arith.constant 4 : index
    %c0_137 = arith.constant 0 : index
    %c0_138 = arith.constant 0 : index
    %135 = vector.load %arg12[%c4_136, %c0_137, %c0_138] : memref<7x16x16xf32, #tpu.memory_space<vmem>>, vector<1x16x16xf32>
    %136 = vector.shape_cast %135 : vector<1x16x16xf32> to vector<16x16xf32>
    %cst_139 = arith.constant dense<0.000000e+00> : vector<16x16xf32>
    %137 = tpu.matmul %134, %136, %cst_139 {dimension_numbers = #tpu.dot_dimension_numbers<[1], [0], [0], [1], [0, 0, 1, 1], [], []>} : vector<16x16xf32>, vector<16x16xf32>, vector<16x16xf32> -> vector<16x16xf32>
    %138 = arith.addf %133, %137 : vector<16x16xf32>
    %c5 = arith.constant 5 : index
    %c0_140 = arith.constant 0 : index
    %139 = vector.load %arg22[%c5, %c0_140] : memref<22x16xf32, #tpu.memory_space<vmem>>, vector<16x16xf32>
    %c5_141 = arith.constant 5 : index
    %c0_142 = arith.constant 0 : index
    %c0_143 = arith.constant 0 : index
    %140 = vector.load %arg12[%c5_141, %c0_142, %c0_143] : memref<7x16x16xf32, #tpu.memory_space<vmem>>, vector<1x16x16xf32>
    %141 = vector.shape_cast %140 : vector<1x16x16xf32> to vector<16x16xf32>
    %cst_144 = arith.constant dense<0.000000e+00> : vector<16x16xf32>
    %142 = tpu.matmul %139, %141, %cst_144 {dimension_numbers = #tpu.dot_dimension_numbers<[1], [0], [0], [1], [0, 0, 1, 1], [], []>} : vector<16x16xf32>, vector<16x16xf32>, vector<16x16xf32> -> vector<16x16xf32>
    %143 = arith.addf %138, %142 : vector<16x16xf32>
    %c6 = arith.constant 6 : index
    %c0_145 = arith.constant 0 : index
    %144 = vector.load %arg22[%c6, %c0_145] : memref<22x16xf32, #tpu.memory_space<vmem>>, vector<16x16xf32>
    %c6_146 = arith.constant 6 : index
    %c0_147 = arith.constant 0 : index
    %c0_148 = arith.constant 0 : index
    %145 = vector.load %arg12[%c6_146, %c0_147, %c0_148] : memref<7x16x16xf32, #tpu.memory_space<vmem>>, vector<1x16x16xf32>
    %146 = vector.shape_cast %145 : vector<1x16x16xf32> to vector<16x16xf32>
    %cst_149 = arith.constant dense<0.000000e+00> : vector<16x16xf32>
    %147 = tpu.matmul %144, %146, %cst_149 {dimension_numbers = #tpu.dot_dimension_numbers<[1], [0], [0], [1], [0, 0, 1, 1], [], []>} : vector<16x16xf32>, vector<16x16xf32>, vector<16x16xf32> -> vector<16x16xf32>
    %148 = arith.addf %143, %147 : vector<16x16xf32>
    %149 = arith.negf %148 : vector<16x16xf32>
    %150 = math.exp %149 : vector<16x16xf32>
    %cst_150 = arith.constant 1.000000e+00 : f32
    %151 = vector.broadcast %cst_150 : f32 to vector<16x16xf32>
    %152 = arith.addf %151, %150 : vector<16x16xf32>
    %153 = arith.divf %151, %152 : vector<16x16xf32>
    %c0_151 = arith.constant 0 : index
    %c0_152 = arith.constant 0 : index
    %154 = vector.load %arg18[%c0_151, %c0_152] : memref<16x512xf32, #tpu.memory_space<vmem>>, vector<16x512xf32>
    %cst_153 = arith.constant dense<0.000000e+00> : vector<16x512xf32>
    %155 = tpu.matmul %153, %154, %cst_153 {dimension_numbers = #tpu.dot_dimension_numbers<[1], [0], [0], [1], [0, 0, 1, 1], [], []>} : vector<16x16xf32>, vector<16x512xf32>, vector<16x512xf32> -> vector<16x512xf32>
    %c0_154 = arith.constant 0 : index
    %c0_155 = arith.constant 0 : index
    %156 = vector.load %arg13[%c0_154, %c0_155] : memref<16x512xf32, #tpu.memory_space<vmem>>, vector<16x512xf32>
    %157 = arith.mulf %29, %156 : vector<16x512xf32>
    %cst_156 = arith.constant dense<0.000000e+00> : vector<512xf32>
    %158 = vector.multi_reduction <add>, %157, %cst_156 [0] : vector<16x512xf32> to vector<512xf32>
    %159 = vector.shape_cast %158 : vector<512xf32> to vector<1x512xf32>
    %c0_157 = arith.constant 0 : index
    %c0_158 = arith.constant 0 : index
    %160 = vector.load %arg14[%c0_157, %c0_158] : memref<512x32xf32, #tpu.memory_space<vmem>>, vector<512x32xf32>
    %cst_159 = arith.constant dense<0.000000e+00> : vector<1x32xf32>
    %161 = tpu.matmul %159, %160, %cst_159 {dimension_numbers = #tpu.dot_dimension_numbers<[1], [0], [0], [1], [0, 0, 1, 1], [], []>} : vector<1x512xf32>, vector<512x32xf32>, vector<1x32xf32> -> vector<1x32xf32>
    %c0_160 = arith.constant 0 : index
    %c0_161 = arith.constant 0 : index
    %162 = vector.load %arg16[%c0_160, %c0_161] : memref<32x8xf32, #tpu.memory_space<vmem>>, vector<32x8xf32>
    %cst_162 = arith.constant dense<0.000000e+00> : vector<1x8xf32>
    %163 = tpu.matmul %161, %162, %cst_162 {dimension_numbers = #tpu.dot_dimension_numbers<[1], [0], [0], [1], [0, 0, 1, 1], [], []>} : vector<1x32xf32>, vector<32x8xf32>, vector<1x8xf32> -> vector<1x8xf32>
    %cst_163 = arith.constant 0.000000e+00 : f32
    %164 = vector.broadcast %cst_163 : f32 to vector<1x8xf32>
    %165 = arith.maximumf %163, %164 : vector<1x8xf32>
    %c0_164 = arith.constant 0 : index
    %c0_165 = arith.constant 0 : index
    %166 = vector.load %arg17[%c0_164, %c0_165] : memref<8x32xf32, #tpu.memory_space<vmem>>, vector<8x32xf32>
    %cst_166 = arith.constant dense<0.000000e+00> : vector<1x32xf32>
    %167 = tpu.matmul %165, %166, %cst_166 {dimension_numbers = #tpu.dot_dimension_numbers<[1], [0], [0], [1], [0, 0, 1, 1], [], []>} : vector<1x8xf32>, vector<8x32xf32>, vector<1x32xf32> -> vector<1x32xf32>
    %168 = arith.negf %167 : vector<1x32xf32>
    %169 = math.exp %168 : vector<1x32xf32>
    %cst_167 = arith.constant 1.000000e+00 : f32
    %170 = vector.broadcast %cst_167 : f32 to vector<1x32xf32>
    %171 = arith.addf %170, %169 : vector<1x32xf32>
    %172 = arith.divf %170, %171 : vector<1x32xf32>
    %c0_168 = arith.constant 0 : index
    %c0_169 = arith.constant 0 : index
    %173 = vector.load %arg15[%c0_168, %c0_169] : memref<32x512xf32, #tpu.memory_space<vmem>>, vector<32x512xf32>
    %cst_170 = arith.constant dense<0.000000e+00> : vector<1x512xf32>
    %174 = tpu.matmul %172, %173, %cst_170 {dimension_numbers = #tpu.dot_dimension_numbers<[1], [0], [0], [1], [0, 0, 1, 1], [], []>} : vector<1x32xf32>, vector<32x512xf32>, vector<1x512xf32> -> vector<1x512xf32>
    %175 = vector.broadcast %174 : vector<1x512xf32> to vector<16x512xf32>
    %176 = arith.mulf %29, %175 : vector<16x512xf32>
    %177 = arith.mulf %155, %176 : vector<16x512xf32>
    %c0_171 = arith.constant 0 : index
    %c0_172 = arith.constant 0 : index
    %c0_173 = arith.constant 0 : index
    %178 = vector.load %arg19[%c0_171, %c0_172, %c0_173] : memref<1x16x512xf32, #tpu.memory_space<vmem>>, vector<1x16x512xf32>
    %179 = vector.shape_cast %178 : vector<1x16x512xf32> to vector<16x512xf32>
    %180 = vector.shape_cast %177 : vector<16x512xf32> to vector<1x16x512xf32>
    tpu.vector_store %arg19[%c0_171, %c0_172, %c0_173], %180 {strides = array<i32>} : memref<1x16x512xf32, #tpu.memory_space<vmem>>, vector<1x16x512xf32>,
    return
  }
  func.func @transform_0(%arg0: i32) -> (i32, i32, i32) {
    %c0_i32 = arith.constant 0 : i32
    %c0_i32_0 = arith.constant 0 : i32
    %c0_i32_1 = arith.constant 0 : i32
    return %arg0, %c0_i32, %c0_i32_0 : i32, i32, i32
  }
  func.func @transform_1(%arg0: i32) -> (i32, i32, i32) {
    %c0_i32 = arith.constant 0 : i32
    %c0_i32_0 = arith.constant 0 : i32
    %c0_i32_1 = arith.constant 0 : i32
    return %arg0, %c0_i32, %c0_i32_0 : i32, i32, i32
  }
  func.func @transform_2(%arg0: i32) -> (i32, i32, i32) {
    %c0_i32 = arith.constant 0 : i32
    %c0_i32_0 = arith.constant 0 : i32
    %c0_i32_1 = arith.constant 0 : i32
    %c0_i32_2 = arith.constant 0 : i32
    return %c0_i32, %c0_i32_0, %c0_i32_1 : i32, i32, i32
  }
  func.func @transform_3(%arg0: i32) -> (i32, i32) {
    %c0_i32 = arith.constant 0 : i32
    %c0_i32_0 = arith.constant 0 : i32
    %c0_i32_1 = arith.constant 0 : i32
    return %c0_i32, %c0_i32_0 : i32, i32
  }
  func.func @transform_4(%arg0: i32) -> (i32, i32) {
    %c0_i32 = arith.constant 0 : i32
    %c0_i32_0 = arith.constant 0 : i32
    %c0_i32_1 = arith.constant 0 : i32
    return %c0_i32, %c0_i32_0 : i32, i32
  }
  func.func @transform_5(%arg0: i32) -> (i32, i32) {
    %c0_i32 = arith.constant 0 : i32
    %c0_i32_0 = arith.constant 0 : i32
    %c0_i32_1 = arith.constant 0 : i32
    return %c0_i32, %c0_i32_0 : i32, i32
  }
  func.func @transform_6(%arg0: i32) -> (i32, i32, i32) {
    %c0_i32 = arith.constant 0 : i32
    %c0_i32_0 = arith.constant 0 : i32
    %c0_i32_1 = arith.constant 0 : i32
    %c0_i32_2 = arith.constant 0 : i32
    return %c0_i32, %c0_i32_0, %c0_i32_1 : i32, i32, i32
  }
  func.func @transform_7(%arg0: i32) -> (i32, i32) {
    %c0_i32 = arith.constant 0 : i32
    %c0_i32_0 = arith.constant 0 : i32
    %c0_i32_1 = arith.constant 0 : i32
    return %c0_i32, %c0_i32_0 : i32, i32
  }
  func.func @transform_8(%arg0: i32) -> (i32, i32, i32) {
    %c0_i32 = arith.constant 0 : i32
    %c0_i32_0 = arith.constant 0 : i32
    %c0_i32_1 = arith.constant 0 : i32
    %c0_i32_2 = arith.constant 0 : i32
    return %c0_i32, %c0_i32_0, %c0_i32_1 : i32, i32, i32
  }
  func.func @transform_9(%arg0: i32) -> (i32, i32, i32) {
    %c0_i32 = arith.constant 0 : i32
    %c0_i32_0 = arith.constant 0 : i32
    %c0_i32_1 = arith.constant 0 : i32
    %c0_i32_2 = arith.constant 0 : i32
    return %c0_i32, %c0_i32_0, %c0_i32_1 : i32, i32, i32
  }
  func.func @transform_10(%arg0: i32) -> (i32, i32) {
    %c0_i32 = arith.constant 0 : i32
    %c0_i32_0 = arith.constant 0 : i32
    %c0_i32_1 = arith.constant 0 : i32
    return %c0_i32, %c0_i32_0 : i32, i32
  }
  func.func @transform_11(%arg0: i32) -> (i32, i32, i32) {
    %c0_i32 = arith.constant 0 : i32
    %c0_i32_0 = arith.constant 0 : i32
    %c0_i32_1 = arith.constant 0 : i32
    %c0_i32_2 = arith.constant 0 : i32
    return %c0_i32, %c0_i32_0, %c0_i32_1 : i32, i32, i32
  }
  func.func @transform_12(%arg0: i32) -> (i32, i32) {
    %c0_i32 = arith.constant 0 : i32
    %c0_i32_0 = arith.constant 0 : i32
    %c0_i32_1 = arith.constant 0 : i32
    return %c0_i32, %c0_i32_0 : i32, i32
  }
  func.func @transform_13(%arg0: i32) -> (i32, i32) {
    %c0_i32 = arith.constant 0 : i32
    %c0_i32_0 = arith.constant 0 : i32
    %c0_i32_1 = arith.constant 0 : i32
    return %c0_i32, %c0_i32_0 : i32, i32
  }
  func.func @transform_14(%arg0: i32) -> (i32, i32) {
    %c0_i32 = arith.constant 0 : i32
    %c0_i32_0 = arith.constant 0 : i32
    %c0_i32_1 = arith.constant 0 : i32
    return %c0_i32, %c0_i32_0 : i32, i32
  }
  func.func @transform_15(%arg0: i32) -> (i32, i32) {
    %c0_i32 = arith.constant 0 : i32
    %c0_i32_0 = arith.constant 0 : i32
    %c0_i32_1 = arith.constant 0 : i32
    return %c0_i32, %c0_i32_0 : i32, i32
  }
  func.func @transform_16(%arg0: i32) -> (i32, i32) {
    %c0_i32 = arith.constant 0 : i32
    %c0_i32_0 = arith.constant 0 : i32
    %c0_i32_1 = arith.constant 0 : i32
    return %c0_i32, %c0_i32_0 : i32, i32
  }
  func.func @transform_17(%arg0: i32) -> (i32, i32) {
    %c0_i32 = arith.constant 0 : i32
    %c0_i32_0 = arith.constant 0 : i32
    %c0_i32_1 = arith.constant 0 : i32
    return %c0_i32, %c0_i32_0 : i32, i32
  }
  func.func @transform_18(%arg0: i32) -> (i32, i32, i32) {
    %c0_i32 = arith.constant 0 : i32
    %c0_i32_0 = arith.constant 0 : i32
    %c0_i32_1 = arith.constant 0 : i32
    return %arg0, %c0_i32, %c0_i32_0 : i32, i32, i32
  }
}

</mosaic_0001>

<bundles_post_ra>
// kernel: dim_forward.1
= control target key start
LH: loop header
LB: loop body
LE: loop exit
PB: predicated region body
PF: predicated region fallthrough
CT: control target
= control target key end

     0   :  { %s5085_s27 = smov 0   ;;  %s6121_s0 = inlined_call_operand.vmem [shape: f32[2,16,64], index: 0, kind: input, shape index: {}]   ;;  %s6122_s1 = inlined_call_operand.vmem [shape: f32[2,16,64], index: 1, kind: input, shape index: {}]   ;;  %s6123_s2 = inlined_call_operand.vmem [shape: bf16[3,64,512], index: 2, kind: input, shape index: {}]   ;;  %s6124_s3 = inlined_call_operand.vmem [shape: f32[1,512], index: 3, kind: input, shape index: {}]   ;;  %s6125_s4 = inlined_call_operand.vmem [shape: bf16[64,128], index: 4, kind: input, shape index: {}]   ;;  %s6126_s5 = inlined_call_operand.vmem [shape: f32[1,128], index: 5, kind: input, shape index: {}]   ;;  %s6127_s6 = inlined_call_operand.vmem [shape: bf16[3,128,128], index: 6, kind: input, shape index: {}]   ;;  %s6128_s7 = inlined_call_operand.vmem [shape: f32[1,128], index: 7, kind: input, shape index: {}]   ;;  %s6129_s8 = inlined_call_operand.vmem [shape: bf16[4,128,16], index: 8, kind: input, shape index: {}]   ;;  %s6130_s9 = inlined_call_operand.vmem [shape: bf16[4,64,16], index: 9, kind: input, shape index: {}]   ;;  %s6131_s10 = inlined_call_operand.vmem [shape: f32[4,16], index: 10, kind: input, shape index: {}]   ;;  %s6132_s11 = inlined_call_operand.vmem [shape: f32[7,16,16], index: 11, kind: input, shape index: {}]   ;;  %s6133_s12 = inlined_call_operand.vmem [shape: f32[16,512], index: 12, kind: input, shape index: {}]   ;;  %s6134_s13 = inlined_call_operand.vmem [shape: f32[512,32], index: 13, kind: input, shape index: {}]   ;;  %s6135_s14 = inlined_call_operand.vmem [shape: f32[32,512], index: 14, kind: input, shape index: {}]   ;;  %s6136_s15 = inlined_call_operand.vmem [shape: f32[32,8], index: 15, kind: input, shape index: {}]   ;;  %s6137_s16 = inlined_call_operand.vmem [shape: f32[8,32], index: 16, kind: input, shape index: {}]   ;;  %s6138_s17 = inlined_call_operand.vmem [shape: f32[16,512], index: 17, kind: input, shape index: {}]   ;;  %s6139_s18 = inlined_call_operand.vmem [shape: f32[2,16,512], index: 18, kind: output, shape index: {}]  }
   0x1   :  { %6141 = sst [smem:[#allocation5_spill]] %s6121_s0 }
   0x2   :  { %6142 = sst [smem:[#allocation6_spill]] %s6122_s1 }
   0x3   :  { %6143 = sst [smem:[#allocation7_spill]] %s6123_s2 }
   0x4 LB: > { %s3868_s28 = sadd.s32 4294967295, %s4984_s27   ;;  %p3872_p0 = scmp.ge.s32.totalorder %s4984_s27, 1  ;;  %s4984_s27 = sphi %s5085_s27, %s28_s27  }
   0x5   : > { %p522_p1 = scmp.lt.s32.totalorder %s4984_s27, 3 }
   0x7   : > { %p523_p2 = pnand %p3872_p0, %p522_p1 }
   0x8   : > { %s6144_s0 = sld [smem:[#allocation7_spill]] (!%p523_p2)  ;;  %p581_p3 = scmp.lt.s32.totalorder (!%p523_p2), %s3868_s28, 1  ;;  %v4986_v2 = vmov (!%p523_p2), 0   ;;  %vm602_vm0 = vcmask (!%p523_p2), 516096   ;;  %vm605_vm1 = vcmask (!%p523_p2), 523264   ;;  %v4987_v6 = vmov (!%p523_p2), 0.0  }
   0x9   : > { %526 = sbr.rel (%p523_p2) target bundleno = 2051 (0x803), region = 92  ;;  %762 = vmatprep.mubr.bf16.mxu0 (!%p523_p2), %v4986_v2  ;;  %805 = vmatprep.mubr.bf16.mxu1 (!%p523_p2), %v4986_v2  ;;  %603 = vst.msk [vmem:[#allocation2] sm:$0x1] (!%p523_p2), %vm602_vm0, %v4987_v6  ;;  %604 = vst.msk [vmem:[#allocation2 + $0x11] sm:$0x1] (!%p523_p2), %vm602_vm0, %v4987_v6  ;;  %s6145_s30 = sld [smem:[#allocation5_spill]] (!%p523_p2) }
   0xa   : > { %1297 = vst [vmem:[#allocation3] sm:$0x1] (!%p523_p2), %v4987_v6  ;;  %1298 = vst [vmem:[#allocation3 + $0x11] sm:$0x1] (!%p523_p2), %v4987_v6  ;;  %v4854_v49 = vld [vmem:[%s6125_s4] sm:$0xff] (!%p523_p2)   ;;  %v4855_v53 = vld [vmem:[%s6125_s4 + $0x8] sm:$0xff] (!%p523_p2)  }
   0xb   : > { %vm4988_vm2 = vmmov (!%p523_p2), 0   ;;  %v4856_v56 = vld [vmem:[%s6125_s4 + $0x10] sm:$0xff] (!%p523_p2)   ;;  %s6146_s22 = sld [smem:[#allocation6_spill]] (!%p523_p2)  ;;  %v4857_v59 = vld [vmem:[%s6125_s4 + $0x18] sm:$0xff] (!%p523_p2)   ;;  %vm2395_vm3 = vcmask (!%p523_p2), 124928   ;;  %vm2398_vm4 = vcmask (!%p523_p2), 130048  }
   0xc   : > { %2396 = vst.msk [vmem:[#allocation4] sm:$0x7] (!%p523_p2), %vm2395_vm3, %v4987_v6  ;;  %2397 = vst.msk [vmem:[#allocation4 + $0x13] sm:$0x7] (!%p523_p2), %vm2395_vm3, %v4987_v6  ;;  %vm3444_vm5 = vcmask (!%p523_p2), 261120   ;;  %vm3520_vm6 = vcmask (!%p523_p2), 64512  }
   0xe   : > { %v4818_v0 = vld [vmem:[%s6144_s0 + $0x84] ss:$16 sps:$4 sm:$0xff] (!%p523_p2)   ;;  %v4820_v1 = vld [vmem:[%s6144_s0 + $0x80] ss:$16 sps:$4 sm:$0xff] (!%p523_p2)   ;;  %v4858_v22 = vld [vmem:[%s6144_s0 + $0x8c] ss:$16 sps:$4 sm:$0xff] (!%p523_p2)  }
   0xf   : > { %730 = vmatprep.subr.bf16.mxu0 (!%p523_p2), %v4818_v0  ;;  %v4821_v3 = vld [vmem:[%s6144_s0 + $0xa4] ss:$16 sps:$4 sm:$0xff] (!%p523_p2)   ;;  %v4823_v4 = vld [vmem:[%s6144_s0 + $0xa0] ss:$16 sps:$4 sm:$0xff] (!%p523_p2)   ;;  %v4860_v23 = vld [vmem:[%s6144_s0 + $0x88] ss:$16 sps:$4 sm:$0xff] (!%p523_p2)   ;;  %773 = vmatprep.subr.bf16.mxu1 (!%p523_p2), %v4858_v22 }
  0x10   : > { %s6148_s28 = smov (!%p581_p3, %s3868_s28), 1  ;;  %731 = vmatpush1.bf16.msra.mxu0 %v4820_v1  ;;  %v4824_v5 = vld [vmem:[%s6144_s0 + $0xc4] ss:$16 sps:$4 sm:$0xff]   ;;  %v4826_v7 = vld [vmem:[%s6144_s0 + $0xc0] ss:$16 sps:$4 sm:$0xff]   ;;  %774 = vmatpush1.bf16.msra.mxu1 %v4860_v23 }
  0x11   : > { %732 = vmatprep.subr.bf16.mxu0 %v4821_v3  ;;  %s4195_s25 = sshll.u32 %s6148_s28, 4  ;;  %v4827_v10 = vld [vmem:[%s6144_s0 + $0xe4] ss:$16 sps:$4 sm:$0xff]   ;;  %v4829_v11 = vld [vmem:[%s6144_s0 + $0xe0] ss:$16 sps:$4 sm:$0xff]   ;;  %s4197_s20 = sshll.u32 %s6148_s28, 6 }
  0x12   : > { %s585_s19 = scalar_lea.vmem %s6145_s30, %s4195_s25  ;;  %v4832_v12 = vld [vmem:[%s6144_s0 + $0x4] ss:$16 sps:$4 sm:$0xff]   ;;  %v4830_v14 = vld [vmem:[%s6144_s0] ss:$16 sps:$4 sm:$0xff]   ;;  %v4861_v26 = vld [vmem:[%s6144_s0 + $0xac] ss:$16 sps:$4 sm:$0xff]   ;;  %s590_s2 = scalar_lea.vmem %s6146_s22, %s4195_s25 }
  0x13   : > { %v597_v8 = vld [vmem:[%s585_s19] sm:$0xff]  ;;  %v598_v9 = vld [vmem:[%s585_s19 + $0x8] sm:$0xff]  ;;  %775 = vmatprep.subr.bf16.mxu1 %v4861_v26  ;;  %s595_s22 = scalar_lea.vmem %s6139_s18, %s4197_s20 }
  0x14   : > { %733 = vmatpush1.bf16.msra.mxu0 %v4823_v4  ;;  %606 = vst.msk [vmem:[#allocation2 + $0x1] sm:$0xff] %vm605_vm1, %v597_v8  ;;  %607 = vst.msk [vmem:[#allocation2 + $0x9] sm:$0xff] %vm605_vm1, %v598_v9  ;;  %v4835_v17 = vld [vmem:[%s6144_s0 + $0x24] ss:$16 sps:$4 sm:$0xff]   ;;  %v4833_v18 = vld [vmem:[%s6144_s0 + $0x20] ss:$16 sps:$4 sm:$0xff]  }
  0x15   : > { %734 = vmatprep.subr.bf16.mxu0 %v4824_v5  ;;  %v4838_v19 = vld [vmem:[%s6144_s0 + $0x44] ss:$16 sps:$4 sm:$0xff]   ;;  %v4836_v20 = vld [vmem:[%s6144_s0 + $0x40] ss:$16 sps:$4 sm:$0xff]   ;;  %v4863_v28 = vld [vmem:[%s6144_s0 + $0xa8] ss:$16 sps:$4 sm:$0xff]  }
  0x16   : > { %v4841_v21 = vld [vmem:[%s6144_s0 + $0x64] ss:$16 sps:$4 sm:$0xff]   ;;  %v4839_v24 = vld [vmem:[%s6144_s0 + $0x60] ss:$16 sps:$4 sm:$0xff]   ;;  %v4864_v30 = vld [vmem:[%s6144_s0 + $0xcc] ss:$16 sps:$4 sm:$0xff]   ;;  %776 = vmatpush1.bf16.msra.mxu1 %v4863_v28 }
  0x17   : > { %v4844_v29 = vld [vmem:[%s6144_s0 + $0x104] ss:$16 sps:$4 sm:$0xff]   ;;  %v4842_v32 = vld [vmem:[%s6144_s0 + $0x100] ss:$16 sps:$4 sm:$0xff]   ;;  %777 = vmatprep.subr.bf16.mxu1 %v4864_v30  ;;  %v4866_v34 = vld [vmem:[%s6144_s0 + $0xc8] ss:$16 sps:$4 sm:$0xff]  }
  0x18   : > { %735 = vmatpush1.bf16.msra.mxu0 %v4826_v7  ;;  %v4847_v33 = vld [vmem:[%s6144_s0 + $0x124] ss:$16 sps:$4 sm:$0xff]   ;;  %v4867_v35 = vld [vmem:[%s6144_s0 + $0xec] ss:$16 sps:$4 sm:$0xff]   ;;  %v4845_v36 = vld [vmem:[%s6144_s0 + $0x120] ss:$16 sps:$4 sm:$0xff]  }
  0x19   : > { %736 = vmatprep.subr.bf16.mxu0 %v4827_v10  ;;  %v4850_v37 = vld [vmem:[%s6144_s0 + $0x144] ss:$16 sps:$4 sm:$0xff]   ;;  %v4869_v38 = vld [vmem:[%s6144_s0 + $0xe8] ss:$16 sps:$4 sm:$0xff]   ;;  %v4848_v39 = vld [vmem:[%s6144_s0 + $0x140] ss:$16 sps:$4 sm:$0xff]  }
  0x1a   : > { %778 = vmatpush1.bf16.msra.mxu1 %v4866_v34  ;;  %v4872_v40 = vld [vmem:[%s6144_s0 + $0xc] ss:$16 sps:$4 sm:$0xff]   ;;  %v4853_v41 = vld [vmem:[%s6144_s0 + $0x164] ss:$16 sps:$4 sm:$0xff]   ;;  %v4870_v42 = vld [vmem:[%s6144_s0 + $0x8] ss:$16 sps:$4 sm:$0xff]  }
  0x1b   : > { %v627_v13 = vld [vmem:[#allocation2 + $0x1] sm:$0xff]  ;;  %v628_v15 = vld [vmem:[#allocation2 + $0x9] sm:$0xff]  ;;  %779 = vmatprep.subr.bf16.mxu1 %v4867_v35  ;;  %v4900_v9 = vld [vmem:[%s6127_s6 + $0x58] sm:$0xff]  }
  0x1c   : > { %737 = vmatpush1.bf16.msra.mxu0 %v4829_v11  ;;  %v629_v16 = vpack.c.bf16 %v628_v15, %v627_v13  ;;  %v608_v25 = vld [vmem:[#allocation2] sm:$0xff]  ;;  %v609_v27 = vld [vmem:[#allocation2 + $0x8] sm:$0xff]  ;;  %v4898_v7 = vld [vmem:[%s6127_s6 + $0x50] sm:$0xff]  }
  0x1d   : > { %899 = vmatprep.subr.bf16.mxu0 %v4832_v12  ;;  %v5177_v31 = vpack.c.bf16 %v609_v27, %v608_v25  ;;  %v4875_v43 = vld [vmem:[%s6144_s0 + $0x2c] ss:$16 sps:$4 sm:$0xff]   ;;  %v4851_v44 = vld [vmem:[%s6144_s0 + $0x160] ss:$16 sps:$4 sm:$0xff]   ;;  %v4873_v47 = vld [vmem:[%s6144_s0 + $0x28] ss:$16 sps:$4 sm:$0xff]  }
  0x1e   : > { %780 = vmatpush1.bf16.msra.mxu1 %v4869_v38  ;;  %v985_v45 = vld [vmem:[#allocation2 + $0x2] sm:$0xff]  ;;  %v986_v46 = vld [vmem:[#allocation2 + $0xa] sm:$0xff] }
  0x1f   : > { %3911 = vmatmul.mubr.msk.bf16.vlgmr.msra.gmra.mrb[0].mxu0 %vm605_vm1, %v629_v16  ;;  %942 = vmatprep.subr.bf16.mxu1 %v4872_v40  ;;  %v4878_v48 = vld [vmem:[%s6144_s0 + $0x4c] ss:$16 sps:$4 sm:$0xff]   ;;  %v987_v50 = vpack.c.bf16 %v986_v46, %v985_v45  ;;  %v4876_v51 = vld [vmem:[%s6144_s0 + $0x48] ss:$16 sps:$4 sm:$0xff]   ;;  %v599_v60 = vld [vmem:[%s590_s2] sm:$0xff] }
  0x20   : > { %900 = vmatpush1.bf16.msra.mxu0 %v4830_v14  ;;  %931 = vmatprep.mubr.bf16.mxu0 %v4986_v2  ;;  %v4881_v52 = vld [vmem:[%s6144_s0 + $0x6c] ss:$16 sps:$4 sm:$0xff]   ;;  %v4879_v54 = vld [vmem:[%s6144_s0 + $0x68] ss:$16 sps:$4 sm:$0xff]   ;;  %v4894_v4 = vld [vmem:[%s6127_s6 + $0x40] sm:$0xff]  }
  0x21   : > { %901 = vmatprep.subr.bf16.mxu0 %v4835_v17  ;;  %3912 = vmatmul.mubr.msk.bf16.vlgmr.msra.gmra.mrb[0].mxu1 %vm605_vm1, %v629_v16  ;;  %v4884_v55 = vld [vmem:[%s6144_s0 + $0x10c] ss:$16 sps:$4 sm:$0xff]   ;;  %v4882_v57 = vld [vmem:[%s6144_s0 + $0x108] ss:$16 sps:$4 sm:$0xff]   ;;  %v4895_v8 = vld [vmem:[%s6127_s6] sm:$0xff]  }
  0x22   : > { %943 = vmatpush1.bf16.msra.mxu1 %v4870_v42  ;;  %974 = vmatprep.mubr.bf16.mxu1 %v4986_v2  ;;  %v4887_v58 = vld [vmem:[%s6144_s0 + $0x12c] ss:$16 sps:$4 sm:$0xff]   ;;  %v4885_v62 = vld [vmem:[%s6144_s0 + $0x128] ss:$16 sps:$4 sm:$0xff]   ;;  %v4902_v11 = vld [vmem:[%s6127_s6 + $0x60] sm:$0xff]  }
  0x23   : > { %944 = vmatprep.subr.bf16.mxu1 %v4875_v43  ;;  %v600_v61 = vld [vmem:[%s590_s2 + $0x8] sm:$0xff]  ;;  %v4899_v12 = vld [vmem:[%s6127_s6 + $0x10] sm:$0xff]   ;;  %v4901_v14 = vld [vmem:[%s6127_s6 + $0x18] sm:$0xff]  }
  0x24   : > { %902 = vmatpush1.bf16.msra.mxu0 %v4833_v18  ;;  %v4890_v63 = vld [vmem:[%s6144_s0 + $0x14c] ss:$16 sps:$4 sm:$0xff]   ;;  %v5280_v0 = vpack.c.bf16 %v600_v61, %v599_v60  ;;  %v4888_v1 = vld [vmem:[%s6144_s0 + $0x148] ss:$16 sps:$4 sm:$0xff]   ;;  %v4906_v15 = vld [vmem:[%s6127_s6 + $0x70] sm:$0xff]  }
  0x25   : > { %903 = vmatprep.subr.bf16.mxu0 %v4838_v19  ;;  %v4893_v3 = vld [vmem:[%s6144_s0 + $0x16c] ss:$16 sps:$4 sm:$0xff]   ;;  %v4903_v16 = vld [vmem:[%s6127_s6 + $0x20] sm:$0xff]   ;;  %v4907_v19 = vld [vmem:[%s6127_s6 + $0x30] sm:$0xff]  }
  0x26   : > { %945 = vmatpush1.bf16.msra.mxu1 %v4873_v47  ;;  %v4896_v5 = vld [vmem:[%s6127_s6 + $0x48] sm:$0xff]   ;;  %v4908_v17 = vld [vmem:[%s6127_s6 + $0x78] sm:$0xff]   ;;  %v5371_v25 = vld [vmem:[%s6124_s3] sm:$0xf] }
  0x27   : > { %946 = vmatprep.subr.bf16.mxu1 %v4878_v48  ;;  %v4897_v10 = vld [vmem:[%s6127_s6 + $0x8] sm:$0xff]   ;;  %v4916_v61 = vld [vmem:[%s6127_s6 + $0xb0] sm:$0xff]  }
  0x28   : > { %904 = vmatpush1.bf16.msra.mxu0 %v4836_v20  ;;  %v4904_v13 = vld [vmem:[%s6127_s6 + $0x68] sm:$0xff]   ;;  %v4909_v20 = vld [vmem:[%s6127_s6 + $0x38] sm:$0xff]  }
  0x29   : > { %905 = vmatprep.subr.bf16.mxu0 %v4841_v21  ;;  %v4905_v18 = vld [vmem:[%s6127_s6 + $0x28] sm:$0xff]   ;;  %v1184_v21 = vlaneseq }
  0x2a   : > { %947 = vmatpush1.bf16.msra.mxu1 %v4876_v51  ;;  %v4912_v51 = vld [vmem:[%s6127_s6 + $0x90] sm:$0xff]   ;;  %v4915_v60 = vld [vmem:[%s6127_s6 + $0xa8] sm:$0xff]  }
  0x2b   : > { %948 = vmatprep.subr.bf16.mxu1 %v4881_v52  ;;  %v5364_v22 = vshrl.u32 %v1184_v21, 7  ;;  %v4937_v21 = vld [vmem:[%s6129_s8 + $0x68] sm:$0xff]  }
  0x2c   : > { %906 = vmatpush1.bf16.msra.mxu0 %v4839_v24 }
  0x2d   : > { %1088 = vmatprep.subr.bf16.mxu0 %v4844_v29  ;;  %v1194_v23 = vsub.s32 2, %v5364_v22  ;;  %v1198_v24 = vsub.s32 3, %v5364_v22 }
  0x2e   : > { %949 = vmatpush1.bf16.msra.mxu1 %v4879_v54 }
  0x2f   : > { %3929 = vmatmul.mubr.msk.bf16.vlgmr.msra.gmra.mrb[0].mxu0 %vm605_vm1, %v5177_v31  ;;  %1131 = vmatprep.subr.bf16.mxu1 %v4884_v55  ;;  %v1195_v26 = vrot.slane %v5371_v25, %v1194_v23  ;;  %v1199_v27 = vrot.slane %v5371_v25, %v1198_v24  ;;  %v4918_v55 = vld [vmem:[%s6130_s9] sm:$0xff]   ;;  %v4938_v23 = vld [vmem:[%s6129_s8 + $0x30] sm:$0xff]  }
  0x30   : > { %1089 = vmatpush1.bf16.msra.mxu0 %v4842_v32  ;;  %1120 = vmatprep.mubr.bf16.mxu0 %v4986_v2  ;;  %v3965_v32 = vld [vmem:[%s6126_s5] ss:$0 sm:$0xff]  ;;  %v4939_v24 = vld [vmem:[%s6129_s8 + $0x70] sm:$0xff]  }
  0x31   : > { %1090 = vmatprep.subr.bf16.mxu0 %v4847_v33  ;;  %3930 = vmatmul.mubr.msk.bf16.vlgmr.msra.gmra.mrb[0].mxu1 %vm605_vm1, %v5177_v31 }
  0x32   : > { %1132 = vmatpush1.bf16.msra.mxu1 %v4882_v57  ;;  %1163 = vmatprep.mubr.bf16.mxu1 %v4986_v2  ;;  %v4891_v2 = vld [vmem:[%s6144_s0 + $0x168] ss:$16 sps:$4 sm:$0xff]  }
  0x33   : > { %1133 = vmatprep.subr.bf16.mxu1 %v4887_v58  ;;  %v4913_v57 = vld [vmem:[%s6127_s6 + $0x98] sm:$0xff]   ;;  %v4920_v58 = vld [vmem:[%s6130_s9 + $0x8] sm:$0xff]  }
  0x34   : > { %1091 = vmatpush1.bf16.msra.mxu0 %v4845_v36 }
  0x35   : > { %1092 = vmatprep.subr.bf16.mxu0 %v4850_v37 }
  0x36   : > { %1134 = vmatpush1.bf16.msra.mxu1 %v4885_v62  ;;  %v4917_v62 = vld [vmem:[%s6127_s6 + $0xb8] sm:$0xff]  }
  0x37   : > { %1135 = vmatprep.subr.bf16.mxu1 %v4890_v63 }
  0x38   : > { %1093 = vmatpush1.bf16.msra.mxu0 %v4848_v39 }
  0x39   : > { %1094 = vmatprep.subr.bf16.mxu0 %v4853_v41  ;;  %v4910_v41 = vld [vmem:[%s6127_s6 + $0x80] sm:$0xff]  }
  0x3a   : > { %1136 = vmatpush1.bf16.msra.mxu1 %v4888_v1 }
  0x3b   : > { %1137 = vmatprep.subr.bf16.mxu1 %v4893_v3  ;;  %v4919_v3 = vld [vmem:[%s6130_s9 + $0x20] sm:$0xff]  }
  0x3c   : > { %1095 = vmatpush1.bf16.msra.mxu0 %v4851_v44  ;;  %v4911_v44 = vld [vmem:[%s6127_s6 + $0x88] sm:$0xff]  }
  0x3d   : > { %4391 = vmatprep.subr.bf16.mxu0 %v4987_v6 }
  0x3e   : > { %1138 = vmatpush1.bf16.msra.mxu1 %v4891_v2 }
  0x3f   : > { %3963 = vmatmul.mubr.msk.bf16.vlgmr.msra.gmra.mrb[0].mxu0 %vm605_vm1, %v987_v50  ;;  %4403 = vmatprep.subr.bf16.mxu1 %v4987_v6 }
  0x40   : > { %4392 = vmatpush3.bf16.msra.mxu0 %v4854_v49  ;;  %4399 = vmatprep.mubr.msk.bf16.mxu0 %vm4988_vm2, %v4987_v6 }
  0x41   : > { %4393 = vmatprep.subr.bf16.mxu0 %v4987_v6  ;;  %3964 = vmatmul.mubr.msk.bf16.vlgmr.msra.gmra.mrb[0].mxu1 %vm605_vm1, %v987_v50 }
  0x42   : > { %4419 = vmatprep.mubr.msk.bf16.mxu1 %vm4988_vm2, %v4987_v6  ;;  %4404 = vmatpush3.bf16.msra.mxu1 %v4894_v4  ;;  %v4921_v4 = vld [vmem:[%s6130_s9 + $0x28] sm:$0xff]  }
  0x43   : > { %4405 = vmatprep.subr.bf16.mxu1 %v4987_v6 }
  0x44   : > { %4394 = vmatpush3.bf16.msra.mxu0 %v4855_v53 }
  0x45   : > { %4395 = vmatprep.subr.bf16.mxu0 %v4987_v6 }
  0x46   : > { %4406 = vmatpush3.bf16.msra.mxu1 %v4896_v5  ;;  %v4922_v5 = vld [vmem:[%s6130_s9 + $0x10] sm:$0xff]  }
  0x47   : > { %4407 = vmatprep.subr.bf16.mxu1 %v4987_v6 }
  0x48   : > { %4396 = vmatpush3.bf16.msra.mxu0 %v4856_v56 }
  0x49   : > { %4397 = vmatprep.subr.bf16.mxu0 %v4987_v6 }
  0x4a   : > { %4408 = vmatpush3.bf16.msra.mxu1 %v4898_v7  ;;  %v4923_v7 = vld [vmem:[%s6130_s9 + $0x30] sm:$0xff]  }
  0x4b   : > { %4409 = vmatprep.subr.bf16.mxu1 %v4987_v6 }
  0x4c   : > { %4398 = vmatpush3.bf16.msra.mxu0 %v4857_v59  ;;  %v4914_v59 = vld [vmem:[%s6127_s6 + $0xa0] sm:$0xff]  }
  0x4d   : > { %4423 = vmatprep.subr.bf16.mxu0 %v4987_v6 }
  0x4e   : > { %4410 = vmatpush3.bf16.msra.mxu1 %v4900_v9  ;;  %v4925_v9 = vld [vmem:[%s6130_s9 + $0x38] sm:$0xff]  }
  0x4f   : > { %4400 = vmatmul.mubr.msk.bf16.vlgmr.msra.gmra.mrb[4].mxu0 %vm605_vm1, %v5280_v0  ;;  %4411 = vmatprep.subr.bf16.mxu1 %v4987_v6 }
  0x50   : > { %4439 = vmatprep.mubr.msk.bf16.mxu0 %vm4988_vm2, %v4987_v6  ;;  %4424 = vmatpush3.bf16.msra.mxu0 %v4895_v8  ;;  %v4924_v8 = vld [vmem:[%s6130_s9 + $0x18] sm:$0xff]  }
  0x51   : > { %4425 = vmatprep.subr.bf16.mxu0 %v4987_v6 }
  0x52   : > { %4412 = vmatpush3.bf16.msra.mxu1 %v4902_v11  ;;  %v4927_v11 = vld [vmem:[%s6129_s8 + $0x40] sm:$0xff]  }
  0x53   : > { %4413 = vmatprep.subr.bf16.mxu1 %v4987_v6 }
  0x54   : > { %4426 = vmatpush3.bf16.msra.mxu0 %v4897_v10  ;;  %v4926_v10 = vld [vmem:[%s6129_s8] sm:$0xff]  }
  0x55   : > { %4427 = vmatprep.subr.bf16.mxu0 %v4987_v6 }
  0x56   : > { %4414 = vmatpush3.bf16.msra.mxu1 %v4904_v13  ;;  %v4929_v13 = vld [vmem:[%s6129_s8 + $0x48] sm:$0xff]  }
  0x57   : > { %4415 = vmatprep.subr.bf16.mxu1 %v4987_v6 }
  0x58   : > { %4428 = vmatpush3.bf16.msra.mxu0 %v4899_v12  ;;  %v4928_v12 = vld [vmem:[%s6129_s8 + $0x8] sm:$0xff]  }
  0x59   : > { %4429 = vmatprep.subr.bf16.mxu0 %v4987_v6 }
  0x5a   : > { %4416 = vmatpush3.bf16.msra.mxu1 %v4906_v15  ;;  %v4931_v15 = vld [vmem:[%s6129_s8 + $0x50] sm:$0xff]  }
  0x5b   : > { %4417 = vmatprep.subr.bf16.mxu1 %v4987_v6 }
  0x5c   : > { %4430 = vmatpush3.bf16.msra.mxu0 %v4901_v14  ;;  %v4930_v14 = vld [vmem:[%s6129_s8 + $0x10] sm:$0xff]  }
  0x5d   : > { %4431 = vmatprep.subr.bf16.mxu0 %v4987_v6 }
  0x5e   : > { %4418 = vmatpush3.bf16.msra.mxu1 %v4908_v17  ;;  %v4933_v17 = vld [vmem:[%s6129_s8 + $0x58] sm:$0xff]  }
  0x5f   : > { %4443 = vmatprep.subr.bf16.mxu1 %v4987_v6 }
  0x60   : > { %4432 = vmatpush3.bf16.msra.mxu0 %v4903_v16  ;;  %v4932_v16 = vld [vmem:[%s6129_s8 + $0x18] sm:$0xff]  }
  0x61   : > { %4433 = vmatprep.subr.bf16.mxu0 %v4987_v6 }
  0x64   : > { %4434 = vmatpush3.bf16.msra.mxu0 %v4905_v18  ;;  %v4934_v18 = vld [vmem:[%s6129_s8 + $0x20] sm:$0xff]  }
  0x65   : > { %4435 = vmatprep.subr.bf16.mxu0 %v4987_v6 }
  0x68   : > { %4436 = vmatpush3.bf16.msra.mxu0 %v4907_v19  ;;  %v4935_v19 = vld [vmem:[%s6129_s8 + $0x60] sm:$0xff]  }
  0x69   : > { %4437 = vmatprep.subr.bf16.mxu0 %v4987_v6 }
  0x6c   : > { %4438 = vmatpush3.bf16.msra.mxu0 %v4909_v20  ;;  %v4936_v20 = vld [vmem:[%s6129_s8 + $0x28] sm:$0xff]  }
  0x6d   : > { %4463 = vmatprep.subr.bf16.mxu0 %v4987_v6 }
 0x112   : > { %v5375_v28 = vpop.f32.mrb[0].mxu0 }
 0x113   : > { %v5377_v29 = vpop.f32.mrb[1].mxu0 }
 0x114   : > { %v5379_v30 = vpop.f32.mrb[2].mxu0  ;;  %v1165_v43 = vpop.f32.mrb[0].mxu1 }
 0x115   : > { %v5381_v31 = vpop.f32.mrb[3].mxu0  ;;  %v5394_v45 = vadd.f32 %v1195_v26, %v1165_v43  ;;  %v1167_v46 = vpop.f32.mrb[1].mxu1  ;;  %v4027_v43 = vld [vmem:[%s6128_s7] ss:$0 sm:$0xff] }
 0x116   : > { %v5397_v47 = vadd.f32 %v1199_v27, %v1167_v46  ;;  %v1169_v48 = vpop.f32.mrb[2].mxu1 }
 0x117   : > { %v5399_v49 = vadd.f32 %v1195_v26, %v1169_v48  ;;  %v1171_v50 = vpop.f32.mrb[3].mxu1  ;;  %v4940_v26 = vld [vmem:[%s6129_s8 + $0x38] sm:$0xff]  }
 0x118   : > { %v5404_v52 = vadd.f32 %v1199_v27, %v1171_v50  ;;  %v4941_v27 = vld [vmem:[%s6129_s8 + $0x78] sm:$0xff]  }
 0x122   : > { %v1288_v33 = vpop.f32.mrb[4].mxu0 }
 0x123   : > { %v1289_v34 = vadd.f32 %v3965_v32, %v1288_v33  ;;  %v4401_v35 = vpop.f32.mrb[5].mxu0 }
 0x124   : > { %v1291_v36 = vpop.f32.mrb[6].mxu0 }
 0x125   : > { %v1295_v37 = vmax.f32 %v1289_v34, 0.0  ;;  %v1292_v38 = vadd.f32 %v3965_v32, %v1291_v36  ;;  %v4402_v39 = vpop.f32.mrb[7].mxu0 }
 0x127   : > { %1299 = vst [vmem:[#allocation3 + $0x1] sm:$0xff] %v1295_v37  ;;  %v1296_v40 = vmax.f32 %v1292_v38, 0.0 }
 0x129   : > { %1300 = vst [vmem:[#allocation3 + $0x9] sm:$0xff] %v1296_v40  ;;  %v1322_v42 = vpack.c.bf16 %v1296_v40, %v1295_v37 }
 0x12b   : > { %4420 = vmatmul.mubr.bf16.vlgmr.msra.gmra.mrb[4].mxu1 %v1322_v42 }
 0x12c   : > { %4444 = vmatpush3.bf16.msra.mxu1 %v4910_v41  ;;  %4459 = vmatprep.mubr.msk.bf16.mxu1 %vm4988_vm2, %v4987_v6 }
 0x12d   : > { %4445 = vmatprep.subr.bf16.mxu1 %v4987_v6 }
 0x12e   : > { %v1301_v53 = vld [vmem:[#allocation3] sm:$0xff] }
 0x130   : > { %v1302_v54 = vld [vmem:[#allocation3 + $0x8] sm:$0xff]  ;;  %4446 = vmatpush3.bf16.msra.mxu1 %v4911_v44 }
 0x131   : > { %v1303_v56 = vpack.c.bf16 %v1302_v54, %v1301_v53  ;;  %4447 = vmatprep.subr.bf16.mxu1 %v4987_v6  ;;  %v1518_v63 = vld [vmem:[#allocation3 + $0x2] sm:$0xff]  ;;  %v1519_v1 = vld [vmem:[#allocation3 + $0xa] sm:$0xff] }
 0x132   : > { %v1520_v2 = vpack.c.bf16 %v1519_v1, %v1518_v63  ;;  %v4947_v63 = vld [vmem:[%s6130_s9 + $0x70] sm:$0xff]   ;;  %v4948_v1 = vld [vmem:[%s6130_s9 + $0x58] sm:$0xff]  }
 0x133   : > { %4440 = vmatmul.mubr.bf16.vlgmr.msra.gmra.mrb[8].mxu0 %v1303_v56 }
 0x134   : > { %4448 = vmatpush3.bf16.msra.mxu1 %v4912_v51  ;;  %4464 = vmatpush3.bf16.msra.mxu0 %v4918_v55 }
 0x135   : > { %4449 = vmatprep.subr.bf16.mxu1 %v4987_v6  ;;  %4465 = vmatprep.subr.bf16.mxu0 %v4987_v6 }
 0x136   : > { %4471 = vmatprep.mubr.msk.bf16.mxu0 %vm4988_vm2, %v4987_v6 }
 0x138   : > { %4450 = vmatpush3.bf16.msra.mxu1 %v4913_v57  ;;  %4466 = vmatpush3.bf16.msra.mxu0 %v4920_v58  ;;  %v4942_v57 = vld [vmem:[%s6130_s9 + $0x40] sm:$0xff]  }
 0x139   : > { %4451 = vmatprep.subr.bf16.mxu1 %v4987_v6  ;;  %4467 = vmatprep.subr.bf16.mxu0 %v4987_v6  ;;  %v4943_v58 = vld [vmem:[%s6130_s9 + $0x60] sm:$0xff]  }
 0x13c   : > { %4452 = vmatpush3.bf16.msra.mxu1 %v4914_v59  ;;  %4468 = vmatpush3.bf16.msra.mxu0 %v4922_v5  ;;  %v4952_v5 = vld [vmem:[%s6129_s8 + $0x88] sm:$0xff]  }
 0x13d   : > { %4453 = vmatprep.subr.bf16.mxu1 %v4987_v6  ;;  %4469 = vmatprep.subr.bf16.mxu0 %v4987_v6 }
 0x140   : > { %4454 = vmatpush3.bf16.msra.mxu1 %v4915_v60  ;;  %4470 = vmatpush3.bf16.msra.mxu0 %v4924_v8  ;;  %v4944_v60 = vld [vmem:[%s6130_s9 + $0x48] sm:$0xff]   ;;  %v4955_v8 = vld [vmem:[%s6129_s8 + $0xd0] sm:$0xff]  }
 0x141   : > { %4455 = vmatprep.subr.bf16.mxu1 %v4987_v6  ;;  %4475 = vmatprep.subr.bf16.mxu0 %v4987_v6 }
 0x143   : > { %4472 = vmatmul.mubr.msk.bf16.vlgmr.msra.gmra.mrb[12].mxu0 %vm605_vm1, %v5280_v0 }
 0x144   : > { %4456 = vmatpush3.bf16.msra.mxu1 %v4916_v61  ;;  %4491 = vmatprep.mubr.msk.bf16.mxu0 %vm4988_vm2, %v4987_v6  ;;  %v4945_v61 = vld [vmem:[%s6130_s9 + $0x68] sm:$0xff]  }
 0x145   : > { %4457 = vmatprep.subr.bf16.mxu1 %v4987_v6  ;;  %4476 = vmatpush3.bf16.msra.mxu0 %v4926_v10  ;;  %v4957_v10 = vld [vmem:[%s6129_s8 + $0xd8] sm:$0xff]  }
 0x146   : > { %4477 = vmatprep.subr.bf16.mxu0 %v4987_v6 }
 0x148   : > { %4458 = vmatpush3.bf16.msra.mxu1 %v4917_v62  ;;  %v4946_v62 = vld [vmem:[%s6130_s9 + $0x50] sm:$0xff]  }
 0x149   : > { %4495 = vmatprep.subr.bf16.mxu1 %v4987_v6  ;;  %4478 = vmatpush3.bf16.msra.mxu0 %v4928_v12  ;;  %v4959_v12 = vld [vmem:[%s6129_s8 + $0xe0] sm:$0xff]  }
 0x14a   : > { %4479 = vmatprep.subr.bf16.mxu0 %v4987_v6 }
 0x14b   : > { %4460 = vmatmul.mubr.bf16.vlgmr.msra.gmra.mrb[8].mxu1 %v1520_v2  ;;  %v4950_v2 = vld [vmem:[%s6129_s8 + $0x80] sm:$0xff]  }
 0x14c   : > { %4496 = vmatpush3.bf16.msra.mxu1 %v4919_v3  ;;  %4503 = vmatprep.mubr.msk.bf16.mxu1 %vm4988_vm2, %v4987_v6  ;;  %v4949_v3 = vld [vmem:[%s6130_s9 + $0x78] sm:$0xff]  }
 0x14d   : > { %4497 = vmatprep.subr.bf16.mxu1 %v4987_v6  ;;  %4480 = vmatpush3.bf16.msra.mxu0 %v4930_v14  ;;  %v4961_v14 = vld [vmem:[%s6129_s8 + $0xe8] sm:$0xff]  }
 0x14e   : > { %4481 = vmatprep.subr.bf16.mxu0 %v4987_v6 }
 0x150   : > { %4498 = vmatpush3.bf16.msra.mxu1 %v4921_v4  ;;  %v4951_v4 = vld [vmem:[%s6129_s8 + $0xc0] sm:$0xff]  }
 0x151   : > { %4499 = vmatprep.subr.bf16.mxu1 %v4987_v6  ;;  %4482 = vmatpush3.bf16.msra.mxu0 %v4932_v16  ;;  %v4963_v16 = vld [vmem:[%s6129_s8 + $0xf0] sm:$0xff]  }
 0x152   : > { %4483 = vmatprep.subr.bf16.mxu0 %v4987_v6 }
 0x154   : > { %4500 = vmatpush3.bf16.msra.mxu1 %v4923_v7  ;;  %v4953_v7 = vld [vmem:[%s6129_s8 + $0xc8] sm:$0xff]  }
 0x155   : > { %4501 = vmatprep.subr.bf16.mxu1 %v4987_v6  ;;  %4484 = vmatpush3.bf16.msra.mxu0 %v4934_v18  ;;  %v4965_v18 = vld [vmem:[%s6129_s8 + $0xf8] sm:$0xff]  }
 0x156   : > { %4485 = vmatprep.subr.bf16.mxu0 %v4987_v6 }
 0x158   : > { %4502 = vmatpush3.bf16.msra.mxu1 %v4925_v9  ;;  %v4956_v9 = vld [vmem:[%s6129_s8 + $0x98] sm:$0xff]  }
 0x159   : > { %4507 = vmatprep.subr.bf16.mxu1 %v4987_v6  ;;  %4486 = vmatpush3.bf16.msra.mxu0 %v4936_v20 }
 0x15a   : > { %4487 = vmatprep.subr.bf16.mxu0 %v4987_v6 }
 0x15b   : > { %4504 = vmatmul.mubr.msk.bf16.vlgmr.msra.gmra.mrb[12].mxu1 %vm605_vm1, %v5280_v0 }
 0x15c   : > { %4508 = vmatpush3.bf16.msra.mxu1 %v4927_v11  ;;  %4523 = vmatprep.mubr.msk.bf16.mxu1 %vm4988_vm2, %v4987_v6  ;;  %v4958_v11 = vld [vmem:[%s6129_s8 + $0xa0] sm:$0xff]  }
 0x15d   : > { %4509 = vmatprep.subr.bf16.mxu1 %v4987_v6  ;;  %4488 = vmatpush3.bf16.msra.mxu0 %v4938_v23 }
 0x15e   : > { %4489 = vmatprep.subr.bf16.mxu0 %v4987_v6 }
 0x160   : > { %4510 = vmatpush3.bf16.msra.mxu1 %v4929_v13  ;;  %v4960_v13 = vld [vmem:[%s6129_s8 + $0xa8] sm:$0xff]  }
 0x161   : > { %4511 = vmatprep.subr.bf16.mxu1 %v4987_v6  ;;  %4490 = vmatpush3.bf16.msra.mxu0 %v4940_v26 }
 0x162   : > { %4527 = vmatprep.subr.bf16.mxu0 %v4987_v6 }
 0x164   : > { %4512 = vmatpush3.bf16.msra.mxu1 %v4931_v15  ;;  %v4962_v15 = vld [vmem:[%s6129_s8 + $0xb0] sm:$0xff]  }
 0x165   : > { %4513 = vmatprep.subr.bf16.mxu1 %v4987_v6 }
 0x168   : > { %4514 = vmatpush3.bf16.msra.mxu1 %v4933_v17  ;;  %v4964_v17 = vld [vmem:[%s6129_s8 + $0xb8] sm:$0xff]  }
 0x169   : > { %4515 = vmatprep.subr.bf16.mxu1 %v4987_v6 }
 0x16c   : > { %4516 = vmatpush3.bf16.msra.mxu1 %v4935_v19 }
 0x16d   : > { %4517 = vmatprep.subr.bf16.mxu1 %v4987_v6 }
 0x170   : > { %4518 = vmatpush3.bf16.msra.mxu1 %v4937_v21 }
 0x171   : > { %4519 = vmatprep.subr.bf16.mxu1 %v4987_v6 }
 0x174   : > { %4520 = vmatpush3.bf16.msra.mxu1 %v4939_v24 }
 0x175   : > { %4521 = vmatprep.subr.bf16.mxu1 %v4987_v6 }
 0x178   : > { %4522 = vmatpush3.bf16.msra.mxu1 %v4941_v27 }
 0x179   : > { %4559 = vmatprep.subr.bf16.mxu1 %v4987_v6 }
 0x1fe   : > { %v1422_v32 = vpop.f32.mrb[4].mxu1 }
 0x1ff   : > { %v4421_v33 = vpop.f32.mrb[5].mxu1 }
 0x200   : > { %v1425_v34 = vpop.f32.mrb[6].mxu1  ;;  %v4156_v33 = vld [vmem:[%s6132_s11 + $0x10] sm:$0xff] }
 0x201   : > { %v4422_v35 = vpop.f32.mrb[7].mxu1 }
 0x206   : > { %v1511_v36 = vpop.f32.mrb[8].mxu0 }
 0x207   : > { %v1512_v37 = vadd.f32 %v1511_v36, %v1422_v32  ;;  %v4441_v38 = vpop.f32.mrb[9].mxu0  ;;  %v2403_v36 = vld [vmem:[%s6132_s11] sm:$0xff] }
 0x208   : > { %v1514_v39 = vpop.f32.mrb[10].mxu0 }
 0x209   : > { %v1515_v40 = vadd.f32 %v1514_v39, %v1425_v34  ;;  %v4442_v41 = vpop.f32.mrb[11].mxu0  ;;  %v4157_v34 = vld [vmem:[%s6132_s11 + $0x18] sm:$0xff] }
 0x20a   : > { %v4656_v35 = vpack.c.bf16 %v4157_v34, %v4156_v33 }
 0x216   : > { %v1723_v19 = vpop.f32.mrb[12].mxu0 }
 0x217   : > { %v4473_v20 = vpop.f32.mrb[13].mxu0 }
 0x218   : > { %v1726_v21 = vpop.f32.mrb[14].mxu0 }
 0x219   : > { %v4474_v24 = vpop.f32.mrb[15].mxu0 }
 0x21e   : > { %v1620_v42 = vpop.f32.mrb[8].mxu1 }
 0x21f   : > { %v1627_v44 = vadd.f32 %v1620_v42, %v1512_v37  ;;  %v4461_v46 = vpop.f32.mrb[9].mxu1  ;;  %v2404_v37 = vld [vmem:[%s6132_s11 + $0x8] sm:$0xff]  ;;  %v4079_v42 = vld [vmem:[%s6131_s10 + $0x1] ss:$0 sm:$0xff] }
 0x220   : > { %v1623_v48 = vpop.f32.mrb[10].mxu1  ;;  %v5666_v38 = vpack.c.bf16 %v2404_v37, %v2403_v36 }
 0x221   : > { %v1636_v50 = vadd.f32 %v4027_v43, %v1627_v44  ;;  %v1628_v51 = vadd.f32 %v1623_v48, %v1515_v40  ;;  %v4462_v53 = vpop.f32.mrb[11].mxu1  ;;  %v4041_v40 = vld [vmem:[%s6131_s10] ss:$0 sm:$0xff] }
 0x223   : > { %v1637_v54 = vadd.f32 %v4027_v43, %v1628_v51  ;;  %v1638_v55 = vmax.f32 %v1636_v50, 0.0 }
 0x225   : > { %v1639_v56 = vmax.f32 %v1637_v54, 0.0 }
 0x227   : > { %v5545_v59 = vpack.c.bf16 %v1639_v56, %v1638_v55 }
 0x229   : > { %4492 = vmatmul.mubr.bf16.vlgmr.msra.gmra.mrb[16].mxu0 %v5545_v59  ;;  %4524 = vmatmul.mubr.bf16.vlgmr.msra.gmra.mrb[16].mxu1 %v5545_v59 }
 0x22a   : > { %4528 = vmatpush3.bf16.msra.mxu0 %v4942_v57  ;;  %4560 = vmatpush3.bf16.msra.mxu1 %v4943_v58 }
 0x22b   : > { %4529 = vmatprep.subr.bf16.mxu0 %v4987_v6  ;;  %4561 = vmatprep.subr.bf16.mxu1 %v4987_v6 }
 0x22c   : > { %4535 = vmatprep.mubr.msk.bf16.mxu0 %vm4988_vm2, %v4987_v6  ;;  %4567 = vmatprep.mubr.msk.bf16.mxu1 %vm4988_vm2, %v4987_v6 }
 0x22e   : > { %4530 = vmatpush3.bf16.msra.mxu0 %v4944_v60  ;;  %4562 = vmatpush3.bf16.msra.mxu1 %v4945_v61  ;;  %v1910_v23 = vpop.f32.mrb[12].mxu1 }
 0x22f   : > { %4531 = vmatprep.subr.bf16.mxu0 %v4987_v6  ;;  %4563 = vmatprep.subr.bf16.mxu1 %v4987_v6  ;;  %v4505_v26 = vpop.f32.mrb[13].mxu1 }
 0x230   : > { %v1913_v27 = vpop.f32.mrb[14].mxu1 }
 0x231   : > { %v4506_v32 = vpop.f32.mrb[15].mxu1 }
 0x232   : > { %4532 = vmatpush3.bf16.msra.mxu0 %v4946_v62  ;;  %4564 = vmatpush3.bf16.msra.mxu1 %v4947_v63 }
 0x233   : > { %4533 = vmatprep.subr.bf16.mxu0 %v4987_v6  ;;  %4565 = vmatprep.subr.bf16.mxu1 %v4987_v6 }
 0x236   : > { %4534 = vmatpush3.bf16.msra.mxu0 %v4948_v1  ;;  %4566 = vmatpush3.bf16.msra.mxu1 %v4949_v3 }
 0x237   : > { %4539 = vmatprep.subr.bf16.mxu0 %v4987_v6  ;;  %4571 = vmatprep.subr.bf16.mxu1 %v4987_v6 }
 0x239   : > { %4536 = vmatmul.mubr.msk.bf16.vlgmr.msra.gmra.mrb[20].mxu0 %vm605_vm1, %v5280_v0  ;;  %4568 = vmatmul.mubr.msk.bf16.vlgmr.msra.gmra.mrb[20].mxu1 %vm605_vm1, %v5280_v0  ;;  %v4954_v0 = vld [vmem:[%s6129_s8 + $0x90] sm:$0xff]  }
 0x23a   : > { %4540 = vmatpush3.bf16.msra.mxu0 %v4950_v2  ;;  %4572 = vmatpush3.bf16.msra.mxu1 %v4951_v4 }
 0x23b   : > { %4541 = vmatprep.subr.bf16.mxu0 %v4987_v6  ;;  %4573 = vmatprep.subr.bf16.mxu1 %v4987_v6 }
 0x23c   : > { %4555 = vmatprep.mubr.msk.bf16.mxu0 %vm4988_vm2, %v4987_v6  ;;  %4587 = vmatprep.mubr.msk.bf16.mxu1 %vm4988_vm2, %v4987_v6 }
 0x23e   : > { %4542 = vmatpush3.bf16.msra.mxu0 %v4952_v5  ;;  %4574 = vmatpush3.bf16.msra.mxu1 %v4953_v7 }
 0x23f   : > { %4543 = vmatprep.subr.bf16.mxu0 %v4987_v6  ;;  %4575 = vmatprep.subr.bf16.mxu1 %v4987_v6 }
 0x242   : > { %4544 = vmatpush3.bf16.msra.mxu0 %v4954_v0  ;;  %4576 = vmatpush3.bf16.msra.mxu1 %v4955_v8 }
 0x243   : > { %4545 = vmatprep.subr.bf16.mxu0 %v4987_v6  ;;  %4577 = vmatprep.subr.bf16.mxu1 %v4987_v6 }
 0x246   : > { %4546 = vmatpush3.bf16.msra.mxu0 %v4956_v9  ;;  %4578 = vmatpush3.bf16.msra.mxu1 %v4957_v10  ;;  %v4117_v9 = vld [vmem:[%s6131_s10 + $0x2] ss:$0 sm:$0xff] }
 0x247   : > { %4547 = vmatprep.subr.bf16.mxu0 %v4987_v6  ;;  %4579 = vmatprep.subr.bf16.mxu1 %v4987_v6 }
 0x24a   : > { %4548 = vmatpush3.bf16.msra.mxu0 %v4958_v11  ;;  %4580 = vmatpush3.bf16.msra.mxu1 %v4959_v12 }
 0x24b   : > { %4549 = vmatprep.subr.bf16.mxu0 %v4987_v6  ;;  %4581 = vmatprep.subr.bf16.mxu1 %v4987_v6 }
 0x24e   : > { %4550 = vmatpush3.bf16.msra.mxu0 %v4960_v13  ;;  %4582 = vmatpush3.bf16.msra.mxu1 %v4961_v14 }
 0x24f   : > { %4551 = vmatprep.subr.bf16.mxu0 %v4987_v6  ;;  %4583 = vmatprep.subr.bf16.mxu1 %v4987_v6 }
 0x252   : > { %4552 = vmatpush3.bf16.msra.mxu0 %v4962_v15  ;;  %4584 = vmatpush3.bf16.msra.mxu1 %v4963_v16  ;;  %v4155_v15 = vld [vmem:[%s6131_s10 + $0x3] ss:$0 sm:$0xff] }
 0x253   : > { %4553 = vmatprep.subr.bf16.mxu0 %v4987_v6  ;;  %4585 = vmatprep.subr.bf16.mxu1 %v4987_v6 }
 0x256   : > { %4554 = vmatpush3.bf16.msra.mxu0 %v4964_v17  ;;  %4586 = vmatpush3.bf16.msra.mxu1 %v4965_v18 }
 0x257   : > { %4657 = vmatprep.subr.bf16.mxu0 %v4656_v35 }
 0x259   : > { %4556 = vmatmul.mubr.bf16.vlgmr.msra.gmra.mrb[24].mxu0 %v5545_v59  ;;  %4588 = vmatmul.mubr.bf16.vlgmr.msra.gmra.mrb[24].mxu1 %v5545_v59 }
 0x25a   : > { %3102 = vmatprep.mubr.f32.mxu1 %v4987_v6  ;;  %4659 = vmatpush3.bf16.msra.mxu0 %v4656_v35 }
 0x25b   : > { %4661 = vmatprep.subr.bf16.mxu0 %v5666_v38 }
 0x2fc   : > { %v1812_v39 = vpop.f32.mrb[16].mxu0  ;;  %v1999_v41 = vpop.f32.mrb[16].mxu1 }
 0x2fd   : > { %v1813_v43 = vadd.f32 %v1812_v39, %v1723_v19  ;;  %v2000_v44 = vadd.f32 %v1999_v41, %v1910_v23  ;;  %v4493_v46 = vpop.f32.mrb[17].mxu0  ;;  %v4525_v48 = vpop.f32.mrb[17].mxu1  ;;  %v4162_v39 = vld [vmem:[%s6132_s11 + $0x20] sm:$0xff] }
 0x2fe   : > { %v1815_v50 = vpop.f32.mrb[18].mxu0  ;;  %v2002_v51 = vpop.f32.mrb[18].mxu1  ;;  %v4166_v46 = vld [vmem:[%s6132_s11 + $0x30] sm:$0xff]  ;;  %v4167_v48 = vld [vmem:[%s6132_s11 + $0x38] sm:$0xff] }
 0x2ff   : > { %v1824_v53 = vadd.f32 %v4041_v40, %v1813_v43  ;;  %v2011_v54 = vadd.f32 %v4079_v42, %v2000_v44  ;;  %v1816_v55 = vadd.f32 %v1815_v50, %v1726_v21  ;;  %v2003_v56 = vadd.f32 %v2002_v51, %v1913_v27  ;;  %v4494_v57 = vpop.f32.mrb[19].mxu0  ;;  %v4526_v58 = vpop.f32.mrb[19].mxu1 }
 0x300   : > { %v4668_v50 = vpack.c.bf16 %v4167_v48, %v4166_v46 }
 0x301   : > { %v2013_v59 = vmax.f32 %v1824_v53, %v2011_v54  ;;  %v1825_v60 = vadd.f32 %v4041_v40, %v1816_v55  ;;  %v2012_v61 = vadd.f32 %v4079_v42, %v2003_v56  ;;  %v4163_v40 = vld [vmem:[%s6132_s11 + $0x28] sm:$0xff]  ;;  %v1190_v54 = vsub.s32 1, %v5364_v22 }
 0x302   : > { %v4664_v42 = vpack.c.bf16 %v4163_v40, %v4162_v39  ;;  %v4171_v55 = vld [vmem:[%s6132_s11 + $0x48] sm:$0xff]  ;;  %v3239_v39 = vld [vmem:[%s6134_s13 + $0x18] sm:$0xff] }
 0x303   : > { %v2014_v62 = vmax.f32 %v1825_v60, %v2012_v61  ;;  %v1191_v56 = vrot.slane %v5371_v25, %v1190_v54  ;;  %v3197_v60 = vld [vmem:[%s6133_s12 + $0x28] sm:$0xff] }
 0x305   : > { %v5710_v58 = vadd.f32 %v1191_v56, %v5381_v31 }
 0x307   : > { %v3205_v31 = vmul.f32 %v3197_v60, %v5710_v58  ;;  %v3260_v60 = vld [vmem:[%s6134_s13 + $0xc0] sm:$0xff] }
 0x30c   : > { %v2099_v63 = vpop.f32.mrb[20].mxu0  ;;  %v2288_v1 = vpop.f32.mrb[20].mxu1 }
 0x30d   : > { %v4537_v3 = vpop.f32.mrb[21].mxu0  ;;  %v4569_v2 = vpop.f32.mrb[21].mxu1 }
 0x30e   : > { %v2102_v4 = vpop.f32.mrb[22].mxu0  ;;  %v2291_v5 = vpop.f32.mrb[22].mxu1  ;;  %v4175_v3 = vld [vmem:[%s6132_s11 + $0x58] sm:$0xff] }
 0x30f   : > { %v4538_v7 = vpop.f32.mrb[23].mxu0  ;;  %v4570_v0 = vpop.f32.mrb[23].mxu1 }
 0x32c   : > { %v2188_v8 = vpop.f32.mrb[24].mxu0  ;;  %v2377_v10 = vpop.f32.mrb[24].mxu1 }
 0x32d   : > { %v2189_v11 = vadd.f32 %v2188_v8, %v2099_v63  ;;  %v2378_v12 = vadd.f32 %v2377_v10, %v2288_v1  ;;  %v4557_v13 = vpop.f32.mrb[25].mxu0  ;;  %v4589_v14 = vpop.f32.mrb[25].mxu1  ;;  %v3193_v63 = vld [vmem:[%s6133_s12 + $0x8] sm:$0xff]  ;;  %v4174_v1 = vld [vmem:[%s6132_s11 + $0x50] sm:$0xff]  ;;  %v4178_v8 = vld [vmem:[%s6132_s11 + $0x60] sm:$0xff] }
 0x32e   : > { %v2191_v16 = vpop.f32.mrb[26].mxu0  ;;  %v2380_v17 = vpop.f32.mrb[26].mxu1  ;;  %v4676_v2 = vpack.c.bf16 %v4175_v3, %v4174_v1  ;;  %v3252_v14 = vld [vmem:[%s6134_s13 + $0x80] sm:$0xff] }
 0x32f   : > { %v2200_v18 = vadd.f32 %v4117_v9, %v2189_v11  ;;  %v2192_v19 = vadd.f32 %v2191_v16, %v2102_v4  ;;  %v2381_v20 = vadd.f32 %v2380_v17, %v2291_v5  ;;  %v4558_v21 = vpop.f32.mrb[27].mxu0  ;;  %v4590_v23 = vpop.f32.mrb[27].mxu1  ;;  %v2389_v26 = vadd.f32 %v4155_v15, %v2378_v12  ;;  %v3244_v3 = vld [vmem:[%s6134_s13 + $0x40] sm:$0xff] }
 0x330   : > { %v3236_v23 = vld [vmem:[%s6134_s13] sm:$0xff] }
 0x331   : > { %v2202_v24 = vmax.f32 %v2013_v59, %v2200_v18  ;;  %v2201_v27 = vadd.f32 %v4117_v9, %v2192_v19  ;;  %v2390_v34 = vadd.f32 %v4155_v15, %v2381_v20  ;;  %v4179_v9 = vld [vmem:[%s6132_s11 + $0x68] sm:$0xff]  ;;  %v5748_v20 = vsub.s32 0, %v5364_v22  ;;  %v3254_v22 = vld [vmem:[%s6134_s13 + $0x90] sm:$0xff] }
 0x332   : > { %v4680_v10 = vpack.c.bf16 %v4179_v9, %v4178_v8  ;;  %v3253_v15 = vld [vmem:[%s6134_s13 + $0x88] sm:$0xff]  ;;  %v3246_v8 = vld [vmem:[%s6134_s13 + $0x50] sm:$0xff]  ;;  %v3247_v9 = vld [vmem:[%s6134_s13 + $0x58] sm:$0xff] }
 0x333   : > { %v2391_v32 = vmax.f32 %v2202_v24, %v2389_v26  ;;  %v2203_v33 = vmax.f32 %v2014_v62, %v2201_v27  ;;  %v5717_v62 = vadd.f32 %v1191_v56, %v5377_v29  ;;  %v4692_v17 = vpack.c.bf16 %v3253_v15, %v3252_v14  ;;  %v3237_v24 = vld [vmem:[%s6134_s13 + $0x8] sm:$0xff]  ;;  %v3255_v27 = vld [vmem:[%s6134_s13 + $0x98] sm:$0xff]  ;;  %v3248_v15 = vld [vmem:[%s6134_s13 + $0x60] sm:$0xff] }
 0x335   : > { %v2393_v35 = vmax.f32 %v2391_v32, 0.0  ;;  %v2392_v36 = vmax.f32 %v2203_v33, %v2390_v34  ;;  %v3201_v29 = vmul.f32 %v3193_v63, %v5717_v62  ;;  %v1187_v32 = vrot.slane %v5371_v25, %v5748_v20  ;;  %v3256_v25 = vld [vmem:[%s6134_s13 + $0xa0] sm:$0xff] }
 0x336   : > { %v4694_v33 = vpack.c.bf16 %v3237_v24, %v3236_v23  ;;  %v3250_v24 = vld [vmem:[%s6134_s13 + $0x70] sm:$0xff] }
 0x337   : > { %2399 = vst.msk [vmem:[#allocation4 + $0x3] sm:$0xff] %vm2398_vm4, %v2393_v35  ;;  %v2394_v37 = vmax.f32 %v2392_v36, 0.0  ;;  %v3215_v4 = vadd.f32 %v3205_v31, %v3201_v29  ;;  %v5767_v34 = vadd.f32 %v1187_v32, %v5379_v30  ;;  %v3196_v35 = vld [vmem:[%s6133_s12 + $0x20] sm:$0xff]  ;;  %v4696_v36 = vpack.c.bf16 %v3255_v27, %v3254_v22  ;;  %v3257_v30 = vld [vmem:[%s6134_s13 + $0xa8] sm:$0xff] }
 0x338   : > { %v4700_v48 = vpack.c.bf16 %v3257_v30, %v3256_v25  ;;  %v3245_v29 = vld [vmem:[%s6134_s13 + $0x48] sm:$0xff] }
 0x339   : > { %2400 = vst.msk [vmem:[#allocation4 + $0xb] sm:$0xff] %vm2398_vm4, %v2394_v37  ;;  %v3216_v0 = vrot.slane %v3215_v4, 4  ;;  %v3238_v37 = vld [vmem:[%s6134_s13 + $0x10] sm:$0xff]  ;;  %v3204_v46 = vmul.f32 %v3196_v35, %v5767_v34  ;;  %v3029_v35 = vld [vmem:[%s6138_s17 + $0x28] sm:$0xff] }
 0x33b   : > { %v3217_v11 = vadd.f32 %v3216_v0, %v3215_v4  ;;  %v3263_v4 = vld [vmem:[%s6134_s13 + $0xd8] sm:$0xff] }
 0x33d   : > { %v3218_v16 = vrot.slane %v3217_v11, 2 }
 0x33e   : > { %v2405_v41 = vld [vmem:[#allocation4 + $0x1] sm:$0xff] }
 0x33f   : > { %4595 = vmatprep.mubr.msk.f32.mxu0 %vm2398_vm4, %v2405_v41  ;;  %v2401_v44 = vld [vmem:[#allocation4] sm:$0xff]  ;;  %v3219_v19 = vadd.f32 %v3218_v16, %v3217_v11  ;;  %v3265_v11 = vld [vmem:[%s6134_s13 + $0xe8] sm:$0xff] }
 0x340   : > { %v2406_v43 = vld [vmem:[#allocation4 + $0x9] sm:$0xff]  ;;  %v3249_v16 = vld [vmem:[%s6134_s13 + $0x68] sm:$0xff] }
 0x341   : > { %4596 = vmatmul.mubr.msk.f32.vlgmr.msra.gmra.mrb[28].mxu0 %vm2398_vm4, %v2406_v43  ;;  %v2402_v51 = vld [vmem:[#allocation4 + $0x8] sm:$0xff]  ;;  %v3220_v26 = vrot.slane %v3219_v19, 1  ;;  %v3192_v43 = vld [vmem:[%s6133_s12] sm:$0xff] }
 0x342   : > { %4663 = vmatpush3.bf16.msra.mxu0 %v5666_v38  ;;  %4602 = vmatprep.mubr.msk.f32.mxu0 %vm2398_vm4, %v2401_v44  ;;  %v2572_v53 = vld [vmem:[#allocation4 + $0x2] sm:$0xff]  ;;  %v4170_v38 = vld [vmem:[%s6132_s11 + $0x40] sm:$0xff]  ;;  %v4698_v44 = vpack.c.bf16 %v3239_v39, %v3238_v37 }
 0x343   : > { %4665 = vmatprep.subr.bf16.mxu0 %v4664_v42  ;;  %v4672_v57 = vpack.c.bf16 %v4171_v55, %v4170_v38  ;;  %v2573_v59 = vld [vmem:[#allocation4 + $0xa] sm:$0xff]  ;;  %v3221_v41 = vadd.f32 %v3220_v26, %v3219_v19  ;;  %v4718_v19 = vpack.c.bf16 %v3249_v16, %v3248_v15 }
 0x344   : > { %v2660_v61 = vld [vmem:[#allocation4 + $0x3] sm:$0xff]  ;;  %v2661_v5 = vld [vmem:[#allocation4 + $0xb] sm:$0xff] }
 0x345   : > { %v2748_v7 = vld [vmem:[#allocation4 + $0x4] sm:$0xff]  ;;  %v2749_v12 = vld [vmem:[#allocation4 + $0xc] sm:$0xff] }
 0x346   : > { %v2836_v13 = vld [vmem:[#allocation4 + $0x5] sm:$0xff]  ;;  %v2837_v18 = vld [vmem:[#allocation4 + $0xd] sm:$0xff] }
 0x347   : > { %v2924_v21 = vld [vmem:[#allocation4 + $0x6] sm:$0xff]  ;;  %v2925_v40 = vld [vmem:[#allocation4 + $0xe] sm:$0xff] }
 0x348   : > { %v3251_v26 = vld [vmem:[%s6134_s13 + $0x78] sm:$0xff]  ;;  %v3028_v39 = vld [vmem:[%s6138_s17 + $0x20] sm:$0xff] }
 0x349   : > { %4603 = vmatmul.mubr.msk.f32.vlgmr.msra.gmra.mrb[28].mxu0 %vm2398_vm4, %v2402_v51  ;;  %v3258_v51 = vld [vmem:[%s6134_s13 + $0xb0] sm:$0xff]  ;;  %v4722_v22 = vpack.c.bf16 %v3251_v26, %v3250_v24  ;;  %v3289_v24 = vld [vmem:[%s6134_s13 + $0x1a8] sm:$0xff] }
 0x34a   : > { %4667 = vmatpush3.bf16.msra.mxu0 %v4664_v42  ;;  %4609 = vmatprep.mubr.msk.f32.mxu0 %vm2398_vm4, %v2572_v53  ;;  %v5785_v42 = vadd.f32 %v1187_v32, %v5375_v28  ;;  %v3241_v28 = vld [vmem:[%s6134_s13 + $0x28] sm:$0xff]  ;;  %v3259_v53 = vld [vmem:[%s6134_s13 + $0xb8] sm:$0xff] }
 0x34b   : > { %4669 = vmatprep.subr.bf16.mxu0 %v4668_v50  ;;  %v4704_v56 = vpack.c.bf16 %v3259_v53, %v3258_v51 }
 0x34c   : > { %v3200_v54 = vmul.f32 %v3192_v43, %v5785_v42 }
 0x34e   : > { %v3208_v55 = vadd.f32 %v3204_v46, %v3200_v54 }
 0x350   : > { %v3209_v31 = vrot.slane %v3208_v55, 4 }
 0x351   : > { %4610 = vmatmul.mubr.msk.f32.vlgmr.msra.gmra.mrb[28].mxu0 %vm2398_vm4, %v2573_v59  ;;  %v3243_v59 = vld [vmem:[%s6134_s13 + $0x38] sm:$0xff] }
 0x352   : > { %4671 = vmatpush3.bf16.msra.mxu0 %v4668_v50  ;;  %4616 = vmatprep.mubr.msk.f32.mxu0 %vm2398_vm4, %v2660_v61  ;;  %v3240_v50 = vld [vmem:[%s6134_s13 + $0x20] sm:$0xff]  ;;  %v3261_v61 = vld [vmem:[%s6134_s13 + $0xc8] sm:$0xff] }
 0x353   : > { %4673 = vmatprep.subr.bf16.mxu0 %v4672_v57  ;;  %v4702_v38 = vpack.c.bf16 %v3241_v28, %v3240_v50  ;;  %v4708_v1 = vpack.c.bf16 %v3261_v61, %v3260_v60  ;;  %v3195_v50 = vld [vmem:[%s6133_s12 + $0x18] sm:$0xff]  ;;  %v3026_v60 = vld [vmem:[%s6138_s17 + $0x10] sm:$0xff] }
 0x354   : > { %v3199_v28 = vld [vmem:[%s6133_s12 + $0x38] sm:$0xff]  ;;  %v3203_v51 = vmul.f32 %v3195_v50, %v5397_v47  ;;  %v3030_v61 = vld [vmem:[%s6138_s17 + $0x30] sm:$0xff] }
 0x355   : > { %v3207_v53 = vmul.f32 %v3199_v28, %v5404_v52 }
 0x359   : > { %4617 = vmatmul.mubr.msk.f32.vlgmr.msra.gmra.mrb[28].mxu0 %vm2398_vm4, %v2661_v5  ;;  %v4710_v5 = vpack.c.bf16 %v3245_v29, %v3244_v3  ;;  %v4690_v3 = vpack.c.bf16 %v3030_v61, %v3026_v60  ;;  %v3279_v60 = vld [vmem:[%s6134_s13 + $0x158] sm:$0xff]  ;;  %v3296_v61 = vld [vmem:[%s6134_s13 + $0x1e0] sm:$0xff] }
 0x35a   : > { %4675 = vmatpush3.bf16.msra.mxu0 %v4672_v57  ;;  %4623 = vmatprep.mubr.msk.f32.mxu0 %vm2398_vm4, %v2748_v7  ;;  %v3242_v57 = vld [vmem:[%s6134_s13 + $0x30] sm:$0xff]  ;;  %v3210_v7 = vadd.f32 %v3209_v31, %v3208_v55  ;;  %v3229_v55 = vadd.f32 %v3207_v53, %v3203_v51  ;;  %v3284_v31 = vld [vmem:[%s6134_s13 + $0x180] sm:$0xff]  ;;  %v3277_v53 = vld [vmem:[%s6134_s13 + $0x148] sm:$0xff] }
 0x35b   : > { %4677 = vmatprep.subr.bf16.mxu0 %v4676_v2  ;;  %v4706_v63 = vpack.c.bf16 %v3243_v59, %v3242_v57  ;;  %v3276_v51 = vld [vmem:[%s6134_s13 + $0x140] sm:$0xff] }
 0x35c   : > { %v3230_v59 = vrot.slane %v3229_v55, 4 }
 0x361   : > { %4624 = vmatmul.mubr.msk.f32.vlgmr.msra.gmra.mrb[28].mxu0 %vm2398_vm4, %v2749_v12  ;;  %v4714_v12 = vpack.c.bf16 %v3247_v9, %v3246_v8  ;;  %v3286_v8 = vld [vmem:[%s6134_s13 + $0x190] sm:$0xff]  ;;  %v3287_v9 = vld [vmem:[%s6134_s13 + $0x198] sm:$0xff] }
 0x362   : > { %4679 = vmatpush3.bf16.msra.mxu0 %v4676_v2  ;;  %4630 = vmatprep.mubr.msk.f32.mxu0 %vm2398_vm4, %v2836_v13  ;;  %v3262_v2 = vld [vmem:[%s6134_s13 + $0xd0] sm:$0xff]  ;;  %v3211_v13 = vrot.slane %v3210_v7, 2  ;;  %v4728_v16 = vpack.c.bf16 %v3287_v9, %v3286_v8 }
 0x363   : > { %4681 = vmatprep.subr.bf16.mxu0 %v4680_v10  ;;  %v4712_v0 = vpack.c.bf16 %v3263_v4, %v3262_v2  ;;  %v3282_v9 = vld [vmem:[%s6134_s13 + $0x170] sm:$0xff] }
 0x369   : > { %4631 = vmatmul.mubr.msk.f32.vlgmr.msra.gmra.mrb[28].mxu0 %vm2398_vm4, %v2837_v18  ;;  %v3267_v18 = vld [vmem:[%s6134_s13 + $0xf8] sm:$0xff] }
 0x36a   : > { %4683 = vmatpush3.bf16.msra.mxu0 %v4680_v10  ;;  %4637 = vmatprep.mubr.msk.f32.mxu0 %vm2398_vm4, %v2924_v21  ;;  %v3264_v10 = vld [vmem:[%s6134_s13 + $0xe0] sm:$0xff]  ;;  %v3212_v21 = vadd.f32 %v3211_v13, %v3210_v7  ;;  %v3269_v7 = vld [vmem:[%s6134_s13 + $0x108] sm:$0xff] }
 0x36b   : > { %4693 = vmatprep.subr.bf16.mxu0 %v4692_v17  ;;  %v4716_v14 = vpack.c.bf16 %v3265_v11, %v3264_v10  ;;  %v3266_v17 = vld [vmem:[%s6134_s13 + $0xf0] sm:$0xff] }
 0x36c   : > { %v4720_v23 = vpack.c.bf16 %v3267_v18, %v3266_v17  ;;  %v3213_v27 = vrot.slane %v3212_v21, 1  ;;  %v3270_v17 = vld [vmem:[%s6134_s13 + $0x110] sm:$0xff]  ;;  %v3271_v18 = vld [vmem:[%s6134_s13 + $0x118] sm:$0xff] }
 0x36d   : > { %v4730_v26 = vpack.c.bf16 %v3271_v18, %v3270_v17  ;;  %v4989_v17 = vmov 0.0|0.0  }
 0x36e   : > { %v3214_v32 = vadd.f32 %v3213_v27, %v3212_v21 }
 0x371   : > { %4638 = vmatmul.mubr.msk.f32.vlgmr.msra.gmra.mrb[28].mxu0 %vm2398_vm4, %v2925_v40  ;;  %v3027_v40 = vld [vmem:[%s6138_s17 + $0x18] sm:$0xff] }
 0x372   : > { %4695 = vmatpush3.bf16.msra.mxu0 %v4694_v33  ;;  %3364 = vmatprep.mubr.f32.mxu0 %v3221_v41  ;;  %v3025_v33 = vld [vmem:[%s6138_s17 + $0x8] sm:$0xff]  ;;  %v3031_v41 = vld [vmem:[%s6138_s17 + $0x38] sm:$0xff] }
 0x373   : > { %4697 = vmatprep.subr.bf16.mxu0 %v4696_v36  ;;  %v3024_v36 = vld [vmem:[%s6138_s17] sm:$0xff]  ;;  %v4684_v37 = vpack.c.bf16 %v3029_v35, %v3025_v33  ;;  %v4688_v30 = vpack.c.bf16 %v3031_v41, %v3027_v40  ;;  %v3273_v35 = vld [vmem:[%s6134_s13 + $0x128] sm:$0xff] }
 0x374   : > { %v4686_v25 = vpack.c.bf16 %v3028_v39, %v3024_v36  ;;  %v3272_v33 = vld [vmem:[%s6134_s13 + $0x120] sm:$0xff]  ;;  %v3291_v39 = vld [vmem:[%s6134_s13 + $0x1b8] sm:$0xff] }
 0x375   : > { %4685 = vmatprep.subr.bf16.mxu1 %v4684_v37  ;;  %v3290_v37 = vld [vmem:[%s6134_s13 + $0x1b0] sm:$0xff]  ;;  %v4734_v40 = vpack.c.bf16 %v3273_v35, %v3272_v33 }
 0x376   : > { %4699 = vmatpush3.bf16.msra.mxu0 %v4698_v44  ;;  %4687 = vmatpush1.bf16.msra.mxu1 %v4686_v25  ;;  %v4736_v25 = vpack.c.bf16 %v3291_v39, %v3290_v37 }
 0x377   : > { %4701 = vmatprep.subr.bf16.mxu0 %v4700_v48  ;;  %4689 = vmatprep.subr.bf16.mxu1 %v4688_v30  ;;  %v3274_v30 = vld [vmem:[%s6134_s13 + $0x130] sm:$0xff] }
 0x37a   : > { %4703 = vmatpush3.bf16.msra.mxu0 %v4702_v38 }
 0x37b   : > { %4705 = vmatprep.subr.bf16.mxu0 %v4704_v56 }
 0x37e   : > { %4707 = vmatpush3.bf16.msra.mxu0 %v4706_v63  ;;  %v3231_v63 = vadd.f32 %v3230_v59, %v3229_v55  ;;  %v4742_v55 = vpack.c.bf16 %v3277_v53, %v3276_v51  ;;  %v3278_v59 = vld [vmem:[%s6134_s13 + $0x150] sm:$0xff]  ;;  %v3604_v51 = vld [vmem:[%s6135_s14 + $0x20] sm:$0xff] }
 0x37f   : > { %4709 = vmatprep.subr.bf16.mxu0 %v4708_v1  ;;  %v3285_v1 = vld [vmem:[%s6134_s13 + $0x188] sm:$0xff] }
 0x380   : > { %v4724_v29 = vpack.c.bf16 %v3285_v1, %v3284_v31  ;;  %v3232_v4 = vrot.slane %v3231_v63, 2  ;;  %v4746_v31 = vpack.c.bf16 %v3279_v60, %v3278_v59  ;;  %v3613_v59 = vld [vmem:[%s6135_s14 + $0x68] sm:$0xff]  ;;  %v3611_v60 = vld [vmem:[%s6135_s14 + $0x58] sm:$0xff] }
 0x382   : > { %4711 = vmatpush3.bf16.msra.mxu0 %v4710_v5  ;;  %v3268_v5 = vld [vmem:[%s6134_s13 + $0x100] sm:$0xff]  ;;  %v3233_v10 = vadd.f32 %v3232_v4, %v3231_v63  ;;  %v3297_v63 = vld [vmem:[%s6134_s13 + $0x1e8] sm:$0xff]  ;;  %v3298_v4 = vld [vmem:[%s6134_s13 + $0x1f0] sm:$0xff] }
 0x383   : > { %4713 = vmatprep.subr.bf16.mxu0 %v4712_v0  ;;  %v4726_v13 = vpack.c.bf16 %v3269_v7, %v3268_v5  ;;  %v3299_v5 = vld [vmem:[%s6134_s13 + $0x1f8] sm:$0xff] }
 0x384   : > { %v3234_v21 = vrot.slane %v3233_v10, 1  ;;  %v4752_v8 = vpack.c.bf16 %v3299_v5, %v3298_v4  ;;  %v3614_v4 = vld [vmem:[%s6135_s14 + $0x70] sm:$0xff] }
 0x386   : > { %4715 = vmatpush3.bf16.msra.mxu0 %v4714_v12  ;;  %v3235_v36 = vadd.f32 %v3234_v21, %v3233_v10  ;;  %v3283_v10 = vld [vmem:[%s6134_s13 + $0x178] sm:$0xff] }
 0x387   : > { %4717 = vmatprep.subr.bf16.mxu0 %v4716_v14  ;;  %v3194_v14 = vld [vmem:[%s6133_s12 + $0x10] sm:$0xff]  ;;  %v3443_v21 = vld [vmem:[%s6136_s15 + $0x18] sm:$0xff] }
 0x38a   : > { %4719 = vmatpush3.bf16.msra.mxu0 %v4718_v19  ;;  %v3198_v19 = vld [vmem:[%s6133_s12 + $0x30] sm:$0xff] }
 0x38b   : > { %4721 = vmatprep.subr.bf16.mxu0 %v4720_v23  ;;  %v3288_v23 = vld [vmem:[%s6134_s13 + $0x1a0] sm:$0xff]  ;;  %v3206_v27 = vmul.f32 %v3198_v19, %v5399_v49  ;;  %v3442_v19 = vld [vmem:[%s6136_s15 + $0x10] sm:$0xff] }
 0x38e   : > { %4723 = vmatpush3.bf16.msra.mxu0 %v4722_v22  ;;  %v3202_v22 = vmul.f32 %v3194_v14, %v5394_v45  ;;  %v3440_v14 = vld [vmem:[%s6136_s15] sm:$0xff] }
 0x38f   : > { %4756 = vmatprep.subr.bf16.mxu0 %v4989_v17 }
 0x390   : > { %v3222_v41 = vadd.f32 %v3206_v27, %v3202_v22 }
 0x391   : > { %3365 = vmatmul.mubr.f32.vlgmr.msra.gmra.mrb[30].mxu0 %v3214_v32  ;;  %v4732_v32 = vpack.c.bf16 %v3289_v24, %v3288_v23  ;;  %v4760_v23 = vpack.c.bf16 %v3443_v21, %v3442_v19  ;;  %v3519_v24 = vld [vmem:[%s6137_s16] sm:$0xff] }
 0x392   : > { %4648 = vmatprep.mubr.msk.f32.mxu0 %vm4988_vm2, %v4987_v6  ;;  %v3223_v50 = vrot.slane %v3222_v41, 4 }
 0x444   : > { %v4639_v43 = vpop.f32.mrb[28].mxu0 }
 0x445   : > { %v4183_v44 = vmul.f32 -1.442695, %v4639_v43  ;;  %v3001_v46 = vpop.f32.mrb[29].mxu0  ;;  %v3275_v43 = vld [vmem:[%s6134_s13 + $0x138] sm:$0xff] }
 0x446   : > { %v4182_v48 = vmul.f32 -1.442695, %v3001_v46  ;;  %v3293_v46 = vld [vmem:[%s6134_s13 + $0x1c8] sm:$0xff] }
 0x447   : > { %4966 = vpow2.f32 %v4183_v44  ;;  %v3292_v44 = vld [vmem:[%s6134_s13 + $0x1c0] sm:$0xff] }
 0x448   : > { %4968 = vpow2.f32 %v4182_v48  ;;  %v4738_v48 = vpack.c.bf16 %v3275_v43, %v3274_v30  ;;  %v4740_v28 = vpack.c.bf16 %v3293_v46, %v3292_v44  ;;  %v3601_v46 = vld [vmem:[%s6135_s14 + $0x8] sm:$0xff] }
 0x451   : > { %v4967_v54 = vpop.eup %4966 }
 0x452   : > { %v4969_v38 = vpop.eup %4968  ;;  %v3019_v57 = vadd.f32 1.0, %v4967_v54  ;;  %v3294_v54 = vld [vmem:[%s6134_s13 + $0x1d0] sm:$0xff] }
 0x453   : > { %v3018_v56 = vadd.f32 1.0, %v4969_v38  ;;  %v3295_v38 = vld [vmem:[%s6134_s13 + $0x1d8] sm:$0xff] }
 0x455   : > { %4970 = vrcp.f32 %v3018_v56  ;;  %v3224_v56 = vadd.f32 %v3223_v50, %v3222_v41 }
 0x456   : > { %4972 = vrcp.f32 %v3019_v57  ;;  %v4744_v57 = vpack.c.bf16 %v3295_v38, %v3294_v54  ;;  %v3602_v38 = vld [vmem:[%s6135_s14 + $0x10] sm:$0xff] }
 0x457   : > { %v3225_v1 = vrot.slane %v3224_v56, 2 }
 0x45f   : > { %v4971_v2 = vpop.eup %4970 }
 0x460   : > { %4184 = vmatmul.mubr.msk.f32.vlgmr.msra.gmra.mrb[28].mxu1 %vm2398_vm4, %v4971_v2  ;;  %v4973_v0 = vpop.eup %4972 }
 0x461   : > { %4691 = vmatpush1.bf16.msra.mxu1 %v4690_v3  ;;  %3108 = vmatprep.mubr.f32.mxu1 %v4987_v6  ;;  %v4748_v3 = vpack.c.bf16 %v3297_v63, %v3296_v61  ;;  %v3615_v61 = vld [vmem:[%s6135_s14 + $0x78] sm:$0xff] }
 0x462   : > { %4725 = vmatprep.subr.bf16.mxu1 %v4724_v29  ;;  %v3280_v29 = vld [vmem:[%s6134_s13 + $0x160] sm:$0xff] }
 0x464   : > { %v4346_v11 = vpop.f32.mrb[30].mxu0  ;;  %4185 = vmatmul.mubr.msk.f32.gmra.mrb[30].mxu1 %vm2398_vm4, %v4973_v0 }
 0x465   : > { %v4347_v12 = vpop.f32.mrb[31].mxu0  ;;  %3179 = vmatprep.mubr.f32.mxu1 %v4987_v6 }
 0x466   : > { %v5918_v15 = vadd.f32 %v4347_v12, %v4346_v11  ;;  %v4754_v11 = vpack.c.bf16 %v3283_v10, %v3282_v9 }
 0x468   : > { %4186 = vmatmul.mubr.msk.f32.vlgmr.msra.gmra.mrb[32].mxu1 %vm2398_vm4, %v4971_v2  ;;  %v3281_v2 = vld [vmem:[%s6134_s13 + $0x168] sm:$0xff] }
 0x469   : > { %4727 = vmatpush3.bf16.msra.mxu1 %v4726_v13  ;;  %3185 = vmatprep.mubr.f32.mxu1 %v4987_v6  ;;  %v4750_v7 = vpack.c.bf16 %v3281_v2, %v3280_v29  ;;  %v3610_v29 = vld [vmem:[%s6135_s14 + $0x50] sm:$0xff] }
 0x46a   : > { %4729 = vmatprep.subr.bf16.mxu1 %v4728_v16  ;;  %v3441_v16 = vld [vmem:[%s6136_s15 + $0x8] sm:$0xff]  ;;  %v4776_v5 = vpack.c.bf16 %v3614_v4, %v3610_v29 }
 0x46b   : > { %v4757_v18 = vpack.c.bf16 %v3441_v16, %v3440_v14 }
 0x46c   : > { %4187 = vmatmul.mubr.msk.f32.gmra.mrb[34].mxu1 %vm2398_vm4, %v4973_v0  ;;  %v3226_v0 = vadd.f32 %v3225_v1, %v3224_v56  ;;  %v3609_v56 = vld [vmem:[%s6135_s14 + $0x48] sm:$0xff]  ;;  %v3608_v1 = vld [vmem:[%s6135_s14 + $0x40] sm:$0xff] }
 0x46d   : > { %4731 = vmatpush3.bf16.msra.mxu1 %v4730_v26  ;;  %3434 = vmatprep.mubr.f32.mxu1 %v3235_v36  ;;  %v4766_v63 = vpack.c.bf16 %v3613_v59, %v3609_v56 }
 0x46e   : > { %4733 = vmatprep.subr.bf16.mxu1 %v4732_v32  ;;  %v3227_v12 = vrot.slane %v3226_v0, 1  ;;  %4758 = vmatpush3.bf16.msra.mxu0 %v4757_v18 }
 0x46f   : > { %4759 = vmatprep.subr.bf16.mxu0 %v4989_v17 }
 0x470   : > { %v3228_v13 = vadd.f32 %v3227_v12, %v3226_v0 }
 0x471   : > { %4735 = vmatpush3.bf16.msra.mxu1 %v4734_v40 }
 0x472   : > { %4737 = vmatprep.subr.bf16.mxu1 %v4736_v25  ;;  %4761 = vmatpush3.bf16.msra.mxu0 %v4760_v23 }
 0x475   : > { %4739 = vmatpush3.bf16.msra.mxu1 %v4738_v48  ;;  %v3605_v48 = vld [vmem:[%s6135_s14 + $0x28] sm:$0xff] }
 0x476   : > { %4741 = vmatprep.subr.bf16.mxu1 %v4740_v28  ;;  %v4762_v50 = vpack.c.bf16 %v3605_v48, %v3601_v46  ;;  %v3607_v28 = vld [vmem:[%s6135_s14 + $0x38] sm:$0xff] }
 0x479   : > { %4743 = vmatpush3.bf16.msra.mxu1 %v4742_v55  ;;  %v3606_v55 = vld [vmem:[%s6135_s14 + $0x30] sm:$0xff] }
 0x47a   : > { %4745 = vmatprep.subr.bf16.mxu1 %v4744_v57  ;;  %v4772_v57 = vpack.c.bf16 %v3606_v55, %v3602_v38 }
 0x47d   : > { %4747 = vmatpush3.bf16.msra.mxu1 %v4746_v31  ;;  %v4774_v31 = vpack.c.bf16 %v3615_v61, %v3611_v60 }
 0x47e   : > { %4749 = vmatprep.subr.bf16.mxu1 %v4748_v3  ;;  %v3612_v3 = vld [vmem:[%s6135_s14 + $0x60] sm:$0xff] }
 0x47f   : > { %v4768_v2 = vpack.c.bf16 %v3612_v3, %v3608_v1 }
 0x481   : > { %4751 = vmatpush3.bf16.msra.mxu1 %v4750_v7 }
 0x482   : > { %4753 = vmatprep.subr.bf16.mxu1 %v4752_v8 }
 0x485   : > { %4755 = vmatpush3.bf16.msra.mxu1 %v4754_v11 }
 0x486   : > { %4651 = vmatprep.subr.mxu1 %v4987_v6 }
 0x488   : > { %3435 = vmatmul.mubr.f32.vlgmr.msra.gmra.mrb[36].mxu1 %v3228_v13 }
 0x489   : > { %4653 = vmatprep.mubr.msk.f32.mxu1 %vm4988_vm2, %v4987_v6  ;;  %4652 = vmatpush3.msra.mxu1 %v3519_v24 }
 0x48a   : > { %4763 = vmatprep.subr.bf16.mxu1 %v4762_v50 }
 0x533   : > { %v6024_v26 = vpop.f32.mrb[28].mxu1 }
 0x534   : > { %v6026_v22 = vpop.f32.mrb[29].mxu1 }
 0x537   : > { %v6028_v27 = vpop.f32.mrb[30].mxu1 }
 0x538   : > { %v6030_v32 = vpop.f32.mrb[31].mxu1 }
 0x53b   : > { %v6032_v33 = vpop.f32.mrb[32].mxu1 }
 0x53c   : > { %v6034_v35 = vpop.f32.mrb[33].mxu1 }
 0x53f   : > { %v6036_v36 = vpop.f32.mrb[34].mxu1 }
 0x540   : > { %v6038_v37 = vpop.f32.mrb[35].mxu1 }
 0x55b   : > { %v4381_v39 = vpop.f32.mrb[36].mxu1 }
 0x55c   : > { %v4382_v40 = vpop.f32.mrb[37].mxu1 }
 0x55d   : > { %v4383_v41 = vadd.f32 %v4382_v40, %v4381_v39 }
 0x55f   : > { %v3437_v25 = vadd.f32 %v4383_v41, %v5918_v15  ;;  %v3603_v15 = vld [vmem:[%s6135_s14 + $0x18] sm:$0xff] }
 0x560   : > { %v4770_v53 = vpack.c.bf16 %v3607_v28, %v3603_v15 }
 0x561   : > { %4649 = vmatmul.mubr.msk.f32.vlgmr.msra.gmra.mrb[32].mxu0 %vm3444_vm5, %v3437_v25 }
 0x562   : > { %3754 = vmatprep.mubr.f32.mxu0 %v4987_v6  ;;  %4771 = vmatprep.subr.bf16.mxu0 %v4770_v53 }
 0x563   : > { %4773 = vmatpush1.bf16.msra.mxu0 %v4772_v57 }
 0x564   : > { %4775 = vmatprep.subr.bf16.mxu0 %v4774_v31 }
 0x567   : > { %4777 = vmatpush1.bf16.msra.mxu0 %v4776_v5 }
 0x634   : > { %v3514_v30 = vpop.f32.mrb[32].mxu0 }
 0x635   : > { %v3518_v43 = vmax.f32 %v3514_v30, 0.0  ;;  %v4650_v44 = vpop.f32.mrb[33].mxu0 }
 0x637   : > { %4654 = vmatmul.mubr.msk.f32.vlgmr.msra.gmra.mrb[38].mxu1 %vm3520_vm6, %v3518_v43 }
 0x638   : > { %3683 = vmatprep.mubr.f32.mxu1 %v4987_v6  ;;  %v3600_v6 = vld [vmem:[%s6135_s14] sm:$0xff] }
 0x639   : > { %v4764_v54 = vpack.c.bf16 %v3604_v51, %v3600_v6 }
 0x63b   : > { %4765 = vmatpush1.bf16.msra.mxu1 %v4764_v54 }
 0x63c   : > { %4767 = vmatprep.subr.bf16.mxu1 %v4766_v63 }
 0x63f   : > { %4769 = vmatpush1.bf16.msra.mxu1 %v4768_v2 }
 0x70a   : > { %v3590_v7 = vpop.f32.mrb[38].mxu1 }
 0x70b   : > { %v4190_v0 = vmul.f32 -1.442695, %v3590_v7  ;;  %v4655_v8 = vpop.f32.mrb[39].mxu1 }
 0x70d   : > { %4974 = vpow2.f32 %v4190_v0 }
 0x717   : > { %v4975_v9 = vpop.eup %4974 }
 0x718   : > { %v3597_v10 = vadd.f32 1.0, %v4975_v9 }
 0x71a   : > { %4976 = vrcp.f32 %v3597_v10 }
 0x724   : > { %v4977_v11 = vpop.eup %4976 }
 0x725   : > { %4191 = vmatmul.mubr.msk.f32.vlgmr.msra.gmra.mrb[40].mxu1 %vm3444_vm5, %v4977_v11  ;;  %4192 = vmatmul.mubr.msk.f32.vlgmr.msra.gmra.mrb[34].mxu0 %vm3444_vm5, %v4977_v11 }
 0x7f8   : > { %v3685_v12 = vpop.f32.mrb[40].mxu1  ;;  %v3756_v13 = vpop.f32.mrb[34].mxu0 }
 0x7f9   : > { %v3764_v14 = vrot.slane %v3685_v12, %v5748_v20  ;;  %v3772_v16 = vrot.slane %v3756_v13, %v5748_v20  ;;  %v3687_v17 = vpop.f32.mrb[41].mxu1  ;;  %v3758_v18 = vpop.f32.mrb[35].mxu0 }
 0x7fa   : > { %v3768_v19 = vrot.slane %v3687_v17, %v5748_v20  ;;  %v3776_v21 = vrot.slane %v3758_v18, %v5748_v20 }
 0x7fb   : > { %v3777_v23 = vmul.f32 %v3764_v14, %v5785_v42  ;;  %v3781_v24 = vmul.f32 %v3764_v14, %v5767_v34  ;;  %v3779_v39 = vmul.f32 %v3772_v16, %v5394_v45  ;;  %v3783_v40 = vmul.f32 %v3772_v16, %v5399_v49 }
 0x7fc   : > { %v3778_v41 = vmul.f32 %v3768_v19, %v5717_v62  ;;  %v3782_v25 = vmul.f32 %v3768_v19, %v5710_v58  ;;  %v3780_v30 = vmul.f32 %v3776_v21, %v5397_v47  ;;  %v3784_v20 = vmul.f32 %v3776_v21, %v5404_v52 }
 0x7fd   : > { %v3785_v42 = vmul.f32 %v3777_v23, %v6024_v26  ;;  %v3789_v34 = vmul.f32 %v3781_v24, %v6028_v27  ;;  %v3787_v45 = vmul.f32 %v3779_v39, %v6032_v33  ;;  %v3791_v49 = vmul.f32 %v3783_v40, %v6036_v36 }
 0x7fe   : > { %v3786_v43 = vmul.f32 %v3778_v41, %v6026_v22  ;;  %v3790_v44 = vmul.f32 %v3782_v25, %v6030_v32  ;;  %v3788_v62 = vmul.f32 %v3780_v30, %v6034_v35  ;;  %v3792_v58 = vmul.f32 %v3784_v20, %v6038_v37 }
 0x7ff   : > { %3793 = vst [vmem:[%s595_s22] sm:$0xff] %v3785_v42  ;;  %3797 = vst [vmem:[%s595_s22 + $0x20] sm:$0xff] %v3789_v34 }
 0x800   : > { %3795 = vst [vmem:[%s595_s22 + $0x10] sm:$0xff] %v3787_v45  ;;  %3799 = vst [vmem:[%s595_s22 + $0x30] sm:$0xff] %v3791_v49 }
 0x801   : > { %3794 = vst [vmem:[%s595_s22 + $0x8] sm:$0xff] %v3786_v43  ;;  %3798 = vst [vmem:[%s595_s22 + $0x28] sm:$0xff] %v3790_v44 }
 0x802   : > { %3796 = vst [vmem:[%s595_s22 + $0x18] sm:$0xff] %v3788_v62  ;;  %3800 = vst [vmem:[%s595_s22 + $0x38] sm:$0xff] %v3792_v58 }
 0x803 PF: > { %s28_s27 = sadd.s32 1, %s4984_s27  }
 0x804   : > { %p25_p4 = scmp.ge.s32.totalorder %s28_s27, 4  }
 0x806   :  { %27 = sbr.rel (!%p25_p4) target bundleno = 4 (0x4), region = 141 }

</bundles_post_ra>
